<compile_context>
chip_gen: v5e
topology: v5e:2x2
jax: 0.10.0
libtpu: 0.0.40
codegen_flags: <defaults>
</compile_context>

<pallas_src>
import functools
import math
from dataclasses import dataclass

import jax
import jax.numpy as jnp
from jax.experimental import pallas as pl
from jax.experimental.pallas import tpu as pltpu

MULTIPLE_OF = 256


@dataclass
class ModelArgs:
    dim: int = 128
    n_heads: int = 4
    norm_eps: float = 1e-6
    max_seq_length: int = 16


def ffn_hidden_dim(dim):
    hidden = 4 * dim
    hidden = int(2 * hidden / 3)
    return MULTIPLE_OF * ((hidden + MULTIPLE_OF - 1) // MULTIPLE_OF)


def _row_tile(m, target=256):
    """Largest multiple of 8 that divides m, capped at `target` (MXU-friendly)."""
    assert m % 8 == 0, "batch*seq must be a multiple of 8"
    best = 8
    for cand in range(8, min(m, target) + 1, 8):
        if m % cand == 0:
            best = cand
    return best


# ----------------------------- Pallas kernels ------------------------------

def _norm_qkv_kernel(x_ref, g_ref, wqkv_ref, q_ref, k_ref, v_ref, *, eps, d):
    """RMSNorm fused into one (rows, D) @ (D, 3D) matmul; split into q/k/v."""
    x = x_ref[...].astype(jnp.float32)
    var = jnp.mean(x * x, axis=-1, keepdims=True)
    xn = x * jax.lax.rsqrt(var + eps) * g_ref[...]
    qkv = jnp.dot(xn, wqkv_ref[...], preferred_element_type=jnp.float32)
    q_ref[...] = qkv[:, :d].astype(q_ref.dtype)
    k_ref[...] = qkv[:, d:2 * d].astype(k_ref.dtype)
    v_ref[...] = qkv[:, 2 * d:].astype(v_ref.dtype)


def pallas_norm_qkv(x2d, g, wqkv, eps):
    M, D = x2d.shape
    tm = _row_tile(M)
    out = jax.ShapeDtypeStruct((M, D), jnp.float32)
    row_spec = pl.BlockSpec((tm, D), lambda i: (i, 0))
    return pl.pallas_call(
        functools.partial(_norm_qkv_kernel, eps=eps, d=D),
        out_shape=(out, out, out),
        grid=(M // tm,),
        in_specs=[row_spec,
                  pl.BlockSpec((1, D), lambda i: (0, 0)),
                  pl.BlockSpec((D, 3 * D), lambda i: (0, 0))],
        out_specs=(row_spec, row_spec, row_spec),
        compiler_params=pltpu.CompilerParams(dimension_semantics=("parallel",)),
    )(x2d, g.reshape(1, D), wqkv)


def _attention_kernel(x_ref, q_ref, k_ref, v_ref, cos_ref, sin_ref, rot_ref,
                      wo_ref, o_ref, *, n_heads, scale):
    """Per-batch attention: RoPE + all heads + softmax + wo projection + residual."""
    q = q_ref[0]            # (S, D) f32, lane-dense
    k = k_ref[0]
    v = v_ref[0]
    cos = cos_ref[...]      # (S, D) — head-tiled cos/sin
    sin = sin_ref[...]
    rot = rot_ref[...]      # (D, D) block-diagonal rotate_half matrix (sign folded in)

    # RoPE, lane-dense: rotate_half(x) per head == x @ rot  (tiny MXU matmul,
    # avoids cross-lane concatenate / sub-lane-group shuffles).
    q = q * cos + jnp.dot(q, rot, preferred_element_type=jnp.float32) * sin
    k = k * cos + jnp.dot(k, rot, preferred_element_type=jnp.float32) * sin

    S = q.shape[0]
    hd = q.shape[1] // n_heads

    # Causal mask built in-register (no (S,S) HBM tensor DMA'd per grid step).
    row = jax.lax.broadcasted_iota(jnp.int32, (S, S), 0)
    col = jax.lax.broadcasted_iota(jnp.int32, (S, S), 1)
    causal = col <= row

    outs = []
    for h in range(n_heads):           # static unroll over heads (all in one kernel)
        lo, hi = h * hd, (h + 1) * hd
        qh = q[:, lo:hi]
        kh = k[:, lo:hi]
        vh = v[:, lo:hi]
        scores = jax.lax.dot_general(qh, kh, (((1,), (1,)), ((), ())),
                                     preferred_element_type=jnp.float32) * scale
        scores = jnp.where(causal, scores, -1e30)
        m = jnp.max(scores, axis=-1, keepdims=True)
        p = jnp.exp(scores - m)
        denom = jnp.sum(p, axis=-1, keepdims=True)
        p = p * pl.reciprocal(denom, approx=True)   # EUP reciprocal, off the VALU
        outs.append(jnp.dot(p, vh, preferred_element_type=jnp.float32))

    attn = jnp.concatenate(outs, axis=-1)           # (S, D) lane-dense
    proj = jnp.dot(attn, wo_ref[...], preferred_element_type=jnp.float32)
    o_ref[0] = (x_ref[0].astype(jnp.float32) + proj).astype(o_ref.dtype)  # fused residual


def pallas_attention_block(x, q, k, v, cos_f, sin_f, rot, wo, n_heads, scale):
    B, S, D = x.shape
    blk = pl.BlockSpec((1, S, D), lambda b: (b, 0, 0))
    return pl.pallas_call(
        functools.partial(_attention_kernel, n_heads=n_heads, scale=scale),
        out_shape=jax.ShapeDtypeStruct((B, S, D), jnp.float32),
        grid=(B,),
        in_specs=[blk, blk, blk, blk,
                  pl.BlockSpec((S, D), lambda b: (0, 0)),
                  pl.BlockSpec((S, D), lambda b: (0, 0)),
                  pl.BlockSpec((D, D), lambda b: (0, 0)),
                  pl.BlockSpec((D, D), lambda b: (0, 0))],
        out_specs=blk,
        compiler_params=pltpu.CompilerParams(dimension_semantics=("parallel",)),
    )(x, q, k, v, cos_f, sin_f, rot, wo)


def _norm_ffn_kernel(h_ref, g_ref, w1_ref, w3_ref, w2_ref, o_ref, *, eps):
    """RMSNorm + SwiGLU FFN + residual, fused."""
    h = h_ref[...].astype(jnp.float32)
    var = jnp.mean(h * h, axis=-1, keepdims=True)
    hn = h * jax.lax.rsqrt(var + eps) * g_ref[...]
    a = jnp.dot(hn, w1_ref[...], preferred_element_type=jnp.float32)
    b = jnp.dot(hn, w3_ref[...], preferred_element_type=jnp.float32)
    act = (a * jax.nn.sigmoid(a)) * b                       # silu(w1 x) * (w3 x)
    out = jnp.dot(act, w2_ref[...], preferred_element_type=jnp.float32)
    o_ref[...] = (h + out).astype(o_ref.dtype)              # fused residual


def pallas_norm_ffn(h2d, g, w1, w3, w2, eps):
    M, D = h2d.shape
    Hf = w1.shape[1]
    tm = _row_tile(M)
    row_spec = pl.BlockSpec((tm, D), lambda i: (i, 0))
    return pl.pallas_call(
        functools.partial(_norm_ffn_kernel, eps=eps),
        out_shape=jax.ShapeDtypeStruct((M, D), jnp.float32),
        grid=(M // tm,),
        in_specs=[row_spec,
                  pl.BlockSpec((1, D), lambda i: (0, 0)),
                  pl.BlockSpec((D, Hf), lambda i: (0, 0)),
                  pl.BlockSpec((D, Hf), lambda i: (0, 0)),
                  pl.BlockSpec((Hf, D), lambda i: (0, 0))],
        out_specs=row_spec,
        compiler_params=pltpu.CompilerParams(dimension_semantics=("parallel",)),
    )(h2d, g.reshape(1, D), w1, w3, w2)


# ------------------------------- model glue --------------------------------

def precompute_cos_sin(seq_len, head_dim, base=10000.0):
    inv_freq = 1.0 / (base ** (jnp.arange(0, head_dim, 2, dtype=jnp.float32) / head_dim))
    t = jnp.arange(seq_len, dtype=jnp.float32)
    freqs = jnp.einsum("i,j->ij", t, inv_freq)
    emb = jnp.concatenate([freqs, freqs], axis=-1)          # (seq, head_dim)
    return jnp.cos(emb), jnp.sin(emb)


def rope_rotation_matrix(n_heads, head_dim):
    """Block-diagonal (D, D) matrix so that x @ R == rotate_half(x) per head."""
    half = head_dim // 2
    idx = jnp.arange(head_dim)
    src = (idx + half) % head_dim
    sign = jnp.where(idx < half, -1.0, 1.0).astype(jnp.float32)
    r_head = jnp.zeros((head_dim, head_dim), jnp.float32).at[src, idx].set(sign)
    return jnp.kron(jnp.eye(n_heads, dtype=jnp.float32), r_head)


def init_block_params(key, args: ModelArgs):
    D = args.dim
    Hf = ffn_hidden_dim(D)
    scale = 0.02

    def normal(k, shape):
        return scale * jax.random.normal(k, shape, dtype=jnp.float32)

    ks = jax.random.split(key, 7)
    return {
        "wq": normal(ks[0], (D, D)),          # stored [in, out]  (== torch weight.T)
        "wk": normal(ks[1], (D, D)),
        "wv": normal(ks[2], (D, D)),
        "wo": normal(ks[3], (D, D)),
        "w1": normal(ks[4], (D, Hf)),
        "w3": normal(ks[5], (D, Hf)),
        "w2": normal(ks[6], (Hf, D)),
        "attention_norm": jnp.ones((D,), jnp.float32),
        "ffn_norm": jnp.ones((D,), jnp.float32),
    }


def transformer_block_forward(params, x, cos, sin, args: ModelArgs):
    B, S, D = x.shape
    H = args.n_heads
    Hd = D // H
    scale = 1.0 / math.sqrt(Hd)
    M = B * S

    # Concatenated QKV weight -> one lane-dense (rows, 3D) matmul in-kernel.
    wqkv = jnp.concatenate([params["wq"], params["wk"], params["wv"]], axis=1)
    # Head-tiled cos/sin (S, D) and rotate_half matrix (constant-folded under jit).
    cos_f = jnp.tile(cos, (1, H))
    sin_f = jnp.tile(sin, (1, H))
    rot = rope_rotation_matrix(H, Hd)

    x2d = x.reshape(M, D)

    # --- attention block: fused norm+QKV, then fused attention+wo+residual ---
    q2d, k2d, v2d = pallas_norm_qkv(x2d, params["attention_norm"], wqkv, args.norm_eps)
    h = pallas_attention_block(
        x,
        q2d.reshape(B, S, D), k2d.reshape(B, S, D), v2d.reshape(B, S, D),
        cos_f, sin_f, rot, params["wo"], H, scale)           # h = x + attn(wo(...))

    # --- feed-forward block: fused norm+SwiGLU+residual ---
    out2d = pallas_norm_ffn(h.reshape(M, D), params["ffn_norm"],
                            params["w1"], params["w3"], params["w2"], args.norm_eps)
    return out2d.reshape(B, S, D)


# Pure-JAX reference (mirrors the torch TransformerBlock exactly).
def reference_block(params, x, cos, sin, args: ModelArgs):
    B, S, D = x.shape
    H = args.n_heads
    Hd = D // H

    def rmsnorm(t, g):
        var = jnp.mean(t * t, axis=-1, keepdims=True)
        return t * jax.lax.rsqrt(var + args.norm_eps) * g

    def rot_half(t):
        t1, t2 = t[..., :Hd // 2], t[..., Hd // 2:]
        return jnp.concatenate([-t2, t1], axis=-1)

    xn = rmsnorm(x, params["attention_norm"])
    q = (xn @ params["wq"]).reshape(B, S, H, Hd)
    k = (xn @ params["wk"]).reshape(B, S, H, Hd)
    v = (xn @ params["wv"]).reshape(B, S, H, Hd)
    cos_b = cos[None, :, None, :]
    sin_b = sin[None, :, None, :]
    q = q * cos_b + rot_half(q) * sin_b
    k = k * cos_b + rot_half(k) * sin_b
    q, k, v = (t.transpose(0, 2, 1, 3) for t in (q, k, v))
    scores = jnp.einsum("bhqd,bhkd->bhqk", q, k) / math.sqrt(Hd)
    mask = jnp.where(jnp.arange(S)[None, :] > jnp.arange(S)[:, None],
                     jnp.float32(-jnp.inf), jnp.float32(0.0))
    probs = jax.nn.softmax(scores + mask, axis=-1)
    attn = jnp.einsum("bhqk,bhkd->bhqd", probs, v).transpose(0, 2, 1, 3).reshape(B, S, D)
    h = x + attn @ params["wo"]
    hn = rmsnorm(h, params["ffn_norm"])
    ffn = (jax.nn.silu(hn @ params["w1"]) * (hn @ params["w3"])) @ params["w2"]
    return h + ffn


if __name__ == "__main__":
    args = ModelArgs(dim=128, n_heads=4, norm_eps=1e-6, max_seq_length=16)
    batch, seq = 2, 8

    key = jax.random.PRNGKey(0)
    pkey, xkey = jax.random.split(key)
    params = init_block_params(pkey, args)
    x = jax.random.normal(xkey, (batch, seq, args.dim), dtype=jnp.float32)
    cos, sin = precompute_cos_sin(seq, args.dim // args.n_heads)

    fwd = jax.jit(lambda p, xx, c, s: transformer_block_forward(p, xx, c, s, args))
    out = fwd(params, x, cos, sin)
    jax.block_until_ready(out)

    ref = reference_block(params, x, cos, sin, args)
    err = float(jnp.max(jnp.abs(out - ref)))

    assert out.shape == (batch, seq, args.dim)
    assert out.dtype == jnp.float32
    assert bool(jnp.all(jnp.isfinite(out)))
    assert err < 5e-2, f"mismatch vs JAX reference: max abs err = {err}"
    print("KERNEL_OK")
</pallas_src>

<mosaic_0001>
module attributes {stable_mosaic.version = 11 : i64} {
  func.func @_norm_qkv_kernel(%arg0: i32, %arg1: memref<16x128xf32, #tpu.memory_space<vmem>>, %arg2: memref<1x128xf32, #tpu.memory_space<vmem>>, %arg3: memref<128x384xf32, #tpu.memory_space<vmem>>, %arg4: memref<16x128xf32, #tpu.memory_space<vmem>>, %arg5: memref<16x128xf32, #tpu.memory_space<vmem>>, %arg6: memref<16x128xf32, #tpu.memory_space<vmem>>) attributes {dimension_semantics = [#tpu.dimension_semantics<parallel>], iteration_bounds = array<i64: 1>, scalar_prefetch = 0 : i64, scratch_operands = 0 : i64, tpu.core_type = #tpu.core_type<tc>, window_params = [{transform_indices = @transform_0, window_bounds = array<i64: 16, 128>}, {pipeline_mode = #tpu.pipeline_mode<synchronous>, transform_indices = @transform_1, window_bounds = array<i64: 1, 128>}, {pipeline_mode = #tpu.pipeline_mode<synchronous>, transform_indices = @transform_2, window_bounds = array<i64: 128, 384>}, {transform_indices = @transform_3, window_bounds = array<i64: 16, 128>}, {transform_indices = @transform_4, window_bounds = array<i64: 16, 128>}, {transform_indices = @transform_5, window_bounds = array<i64: 16, 128>}]} {
    %c0 = arith.constant 0 : index
    %c0_0 = arith.constant 0 : index
    %0 = vector.load %arg1[%c0, %c0_0] : memref<16x128xf32, #tpu.memory_space<vmem>>, vector<16x128xf32>
    %1 = arith.mulf %0, %0 : vector<16x128xf32>
    %cst = arith.constant dense<0.000000e+00> : vector<16xf32>
    %2 = vector.multi_reduction <add>, %1, %cst [1] : vector<16x128xf32> to vector<16xf32>
    %3 = vector.shape_cast %2 : vector<16xf32> to vector<16x1xf32>
    %cst_1 = arith.constant 1.280000e+02 : f32
    %4 = vector.broadcast %cst_1 : f32 to vector<16x1xf32>
    %5 = arith.divf %3, %4 : vector<16x1xf32>
    %cst_2 = arith.constant 9.99999997E-7 : f32
    %6 = vector.broadcast %cst_2 : f32 to vector<16x1xf32>
    %7 = arith.addf %5, %6 : vector<16x1xf32>
    %8 = math.rsqrt %7 : vector<16x1xf32>
    %9 = vector.broadcast %8 : vector<16x1xf32> to vector<16x128xf32>
    %10 = arith.mulf %0, %9 : vector<16x128xf32>
    %c0_3 = arith.constant 0 : index
    %c0_4 = arith.constant 0 : index
    %11 = vector.load %arg2[%c0_3, %c0_4] : memref<1x128xf32, #tpu.memory_space<vmem>>, vector<1x128xf32>
    %12 = vector.broadcast %11 : vector<1x128xf32> to vector<16x128xf32>
    %13 = arith.mulf %10, %12 : vector<16x128xf32>
    %c0_5 = arith.constant 0 : index
    %c0_6 = arith.constant 0 : index
    %14 = vector.load %arg3[%c0_5, %c0_6] : memref<128x384xf32, #tpu.memory_space<vmem>>, vector<128x384xf32>
    %cst_7 = arith.constant dense<0.000000e+00> : vector<16x384xf32>
    %15 = tpu.matmul %13, %14, %cst_7 {dimension_numbers = #tpu.dot_dimension_numbers<[1], [0], [0], [1], [0, 0, 1, 1], [], []>} : vector<16x128xf32>, vector<128x384xf32>, vector<16x384xf32> -> vector<16x384xf32>
    %16 = vector.extract_strided_slice %15 {offsets = [0, 0], sizes = [16, 128], strides = [1, 1]} : vector<16x384xf32> to vector<16x128xf32>
    %c0_8 = arith.constant 0 : index
    %c0_9 = arith.constant 0 : index
    %17 = vector.load %arg4[%c0_8, %c0_9] : memref<16x128xf32, #tpu.memory_space<vmem>>, vector<16x128xf32>
    tpu.vector_store %arg4[%c0_8, %c0_9], %16 {strides = array<i32>} : memref<16x128xf32, #tpu.memory_space<vmem>>, vector<16x128xf32>,
    %18 = vector.extract_strided_slice %15 {offsets = [0, 128], sizes = [16, 128], strides = [1, 1]} : vector<16x384xf32> to vector<16x128xf32>
    %c0_10 = arith.constant 0 : index
    %c0_11 = arith.constant 0 : index
    %19 = vector.load %arg5[%c0_10, %c0_11] : memref<16x128xf32, #tpu.memory_space<vmem>>, vector<16x128xf32>
    tpu.vector_store %arg5[%c0_10, %c0_11], %18 {strides = array<i32>} : memref<16x128xf32, #tpu.memory_space<vmem>>, vector<16x128xf32>,
    %20 = vector.extract_strided_slice %15 {offsets = [0, 256], sizes = [16, 128], strides = [1, 1]} : vector<16x384xf32> to vector<16x128xf32>
    %c0_12 = arith.constant 0 : index
    %c0_13 = arith.constant 0 : index
    %21 = vector.load %arg6[%c0_12, %c0_13] : memref<16x128xf32, #tpu.memory_space<vmem>>, vector<16x128xf32>
    tpu.vector_store %arg6[%c0_12, %c0_13], %20 {strides = array<i32>} : memref<16x128xf32, #tpu.memory_space<vmem>>, vector<16x128xf32>,
    return
  }
  func.func @transform_0(%arg0: i32) -> (i32, i32) {
    %c0_i32 = arith.constant 0 : i32
    %c0_i32_0 = arith.constant 0 : i32
    return %arg0, %c0_i32 : i32, i32
  }
  func.func @transform_1(%arg0: i32) -> (i32, i32) {
    %c0_i32 = arith.constant 0 : i32
    %c0_i32_0 = arith.constant 0 : i32
    %c0_i32_1 = arith.constant 0 : i32
    return %c0_i32, %c0_i32_0 : i32, i32
  }
  func.func @transform_2(%arg0: i32) -> (i32, i32) {
    %c0_i32 = arith.constant 0 : i32
    %c0_i32_0 = arith.constant 0 : i32
    %c0_i32_1 = arith.constant 0 : i32
    return %c0_i32, %c0_i32_0 : i32, i32
  }
  func.func @transform_3(%arg0: i32) -> (i32, i32) {
    %c0_i32 = arith.constant 0 : i32
    %c0_i32_0 = arith.constant 0 : i32
    return %arg0, %c0_i32 : i32, i32
  }
  func.func @transform_4(%arg0: i32) -> (i32, i32) {
    %c0_i32 = arith.constant 0 : i32
    %c0_i32_0 = arith.constant 0 : i32
    return %arg0, %c0_i32 : i32, i32
  }
  func.func @transform_5(%arg0: i32) -> (i32, i32) {
    %c0_i32 = arith.constant 0 : i32
    %c0_i32_0 = arith.constant 0 : i32
    return %arg0, %c0_i32 : i32, i32
  }
}

module attributes {stable_mosaic.version = 11 : i64} {
  func.func @_norm_ffn_kernel(%arg0: i32, %arg1: memref<16x128xf32, #tpu.memory_space<vmem>>, %arg2: memref<1x128xf32, #tpu.memory_space<vmem>>, %arg3: memref<128x512xf32, #tpu.memory_space<vmem>>, %arg4: memref<128x512xf32, #tpu.memory_space<vmem>>, %arg5: memref<512x128xf32, #tpu.memory_space<vmem>>, %arg6: memref<16x128xf32, #tpu.memory_space<vmem>>) attributes {dimension_semantics = [#tpu.dimension_semantics<parallel>], iteration_bounds = array<i64: 1>, scalar_prefetch = 0 : i64, scratch_operands = 0 : i64, tpu.core_type = #tpu.core_type<tc>, window_params = [{transform_indices = @transform_0, window_bounds = array<i64: 16, 128>}, {pipeline_mode = #tpu.pipeline_mode<synchronous>, transform_indices = @transform_1, window_bounds = array<i64: 1, 128>}, {pipeline_mode = #tpu.pipeline_mode<synchronous>, transform_indices = @transform_2, window_bounds = array<i64: 128, 512>}, {pipeline_mode = #tpu.pipeline_mode<synchronous>, transform_indices = @transform_3, window_bounds = array<i64: 128, 512>}, {pipeline_mode = #tpu.pipeline_mode<synchronous>, transform_indices = @transform_4, window_bounds = array<i64: 512, 128>}, {transform_indices = @transform_5, window_bounds = array<i64: 16, 128>}]} {
    %c0 = arith.constant 0 : index
    %c0_0 = arith.constant 0 : index
    %0 = vector.load %arg1[%c0, %c0_0] : memref<16x128xf32, #tpu.memory_space<vmem>>, vector<16x128xf32>
    %1 = arith.mulf %0, %0 : vector<16x128xf32>
    %cst = arith.constant dense<0.000000e+00> : vector<16xf32>
    %2 = vector.multi_reduction <add>, %1, %cst [1] : vector<16x128xf32> to vector<16xf32>
    %3 = vector.shape_cast %2 : vector<16xf32> to vector<16x1xf32>
    %cst_1 = arith.constant 1.280000e+02 : f32
    %4 = vector.broadcast %cst_1 : f32 to vector<16x1xf32>
    %5 = arith.divf %3, %4 : vector<16x1xf32>
    %cst_2 = arith.constant 9.99999997E-7 : f32
    %6 = vector.broadcast %cst_2 : f32 to vector<16x1xf32>
    %7 = arith.addf %5, %6 : vector<16x1xf32>
    %8 = math.rsqrt %7 : vector<16x1xf32>
    %9 = vector.broadcast %8 : vector<16x1xf32> to vector<16x128xf32>
    %10 = arith.mulf %0, %9 : vector<16x128xf32>
    %c0_3 = arith.constant 0 : index
    %c0_4 = arith.constant 0 : index
    %11 = vector.load %arg2[%c0_3, %c0_4] : memref<1x128xf32, #tpu.memory_space<vmem>>, vector<1x128xf32>
    %12 = vector.broadcast %11 : vector<1x128xf32> to vector<16x128xf32>
    %13 = arith.mulf %10, %12 : vector<16x128xf32>
    %c0_5 = arith.constant 0 : index
    %c0_6 = arith.constant 0 : index
    %14 = vector.load %arg3[%c0_5, %c0_6] : memref<128x512xf32, #tpu.memory_space<vmem>>, vector<128x512xf32>
    %cst_7 = arith.constant dense<0.000000e+00> : vector<16x512xf32>
    %15 = tpu.matmul %13, %14, %cst_7 {dimension_numbers = #tpu.dot_dimension_numbers<[1], [0], [0], [1], [0, 0, 1, 1], [], []>} : vector<16x128xf32>, vector<128x512xf32>, vector<16x512xf32> -> vector<16x512xf32>
    %c0_8 = arith.constant 0 : index
    %c0_9 = arith.constant 0 : index
    %16 = vector.load %arg4[%c0_8, %c0_9] : memref<128x512xf32, #tpu.memory_space<vmem>>, vector<128x512xf32>
    %cst_10 = arith.constant dense<0.000000e+00> : vector<16x512xf32>
    %17 = tpu.matmul %13, %16, %cst_10 {dimension_numbers = #tpu.dot_dimension_numbers<[1], [0], [0], [1], [0, 0, 1, 1], [], []>} : vector<16x128xf32>, vector<128x512xf32>, vector<16x512xf32> -> vector<16x512xf32>
    %18 = arith.negf %15 : vector<16x512xf32>
    %19 = math.exp %18 : vector<16x512xf32>
    %cst_11 = arith.constant 1.000000e+00 : f32
    %20 = vector.broadcast %cst_11 : f32 to vector<16x512xf32>
    %21 = arith.addf %20, %19 : vector<16x512xf32>
    %22 = arith.divf %20, %21 : vector<16x512xf32>
    %23 = arith.mulf %15, %22 : vector<16x512xf32>
    %24 = arith.mulf %23, %17 : vector<16x512xf32>
    %c0_12 = arith.constant 0 : index
    %c0_13 = arith.constant 0 : index
    %25 = vector.load %arg5[%c0_12, %c0_13] : memref<512x128xf32, #tpu.memory_space<vmem>>, vector<512x128xf32>
    %cst_14 = arith.constant dense<0.000000e+00> : vector<16x128xf32>
    %26 = tpu.matmul %24, %25, %cst_14 {dimension_numbers = #tpu.dot_dimension_numbers<[1], [0], [0], [1], [0, 0, 1, 1], [], []>} : vector<16x512xf32>, vector<512x128xf32>, vector<16x128xf32> -> vector<16x128xf32>
    %27 = arith.addf %0, %26 : vector<16x128xf32>
    %c0_15 = arith.constant 0 : index
    %c0_16 = arith.constant 0 : index
    %28 = vector.load %arg6[%c0_15, %c0_16] : memref<16x128xf32, #tpu.memory_space<vmem>>, vector<16x128xf32>
    tpu.vector_store %arg6[%c0_15, %c0_16], %27 {strides = array<i32>} : memref<16x128xf32, #tpu.memory_space<vmem>>, vector<16x128xf32>,
    return
  }
  func.func @transform_0(%arg0: i32) -> (i32, i32) {
    %c0_i32 = arith.constant 0 : i32
    %c0_i32_0 = arith.constant 0 : i32
    return %arg0, %c0_i32 : i32, i32
  }
  func.func @transform_1(%arg0: i32) -> (i32, i32) {
    %c0_i32 = arith.constant 0 : i32
    %c0_i32_0 = arith.constant 0 : i32
    %c0_i32_1 = arith.constant 0 : i32
    return %c0_i32, %c0_i32_0 : i32, i32
  }
  func.func @transform_2(%arg0: i32) -> (i32, i32) {
    %c0_i32 = arith.constant 0 : i32
    %c0_i32_0 = arith.constant 0 : i32
    %c0_i32_1 = arith.constant 0 : i32
    return %c0_i32, %c0_i32_0 : i32, i32
  }
  func.func @transform_3(%arg0: i32) -> (i32, i32) {
    %c0_i32 = arith.constant 0 : i32
    %c0_i32_0 = arith.constant 0 : i32
    %c0_i32_1 = arith.constant 0 : i32
    return %c0_i32, %c0_i32_0 : i32, i32
  }
  func.func @transform_4(%arg0: i32) -> (i32, i32) {
    %c0_i32 = arith.constant 0 : i32
    %c0_i32_0 = arith.constant 0 : i32
    %c0_i32_1 = arith.constant 0 : i32
    return %c0_i32, %c0_i32_0 : i32, i32
  }
  func.func @transform_5(%arg0: i32) -> (i32, i32) {
    %c0_i32 = arith.constant 0 : i32
    %c0_i32_0 = arith.constant 0 : i32
    return %arg0, %c0_i32 : i32, i32
  }
}

module attributes {stable_mosaic.version = 11 : i64} {
  func.func @_attention_kernel(%arg0: i32, %arg1: memref<1x8x128xf32, #tpu.memory_space<vmem>>, %arg2: memref<1x8x128xf32, #tpu.memory_space<vmem>>, %arg3: memref<1x8x128xf32, #tpu.memory_space<vmem>>, %arg4: memref<1x8x128xf32, #tpu.memory_space<vmem>>, %arg5: memref<8x128xf32, #tpu.memory_space<vmem>>, %arg6: memref<8x128xf32, #tpu.memory_space<vmem>>, %arg7: memref<128x128xf32, #tpu.memory_space<vmem>>, %arg8: memref<128x128xf32, #tpu.memory_space<vmem>>, %arg9: memref<1x8x128xf32, #tpu.memory_space<vmem>>) attributes {dimension_semantics = [#tpu.dimension_semantics<parallel>], iteration_bounds = array<i64: 2>, scalar_prefetch = 0 : i64, scratch_operands = 0 : i64, tpu.core_type = #tpu.core_type<tc>, window_params = [{transform_indices = @transform_0, window_bounds = array<i64: 1, 8, 128>}, {transform_indices = @transform_1, window_bounds = array<i64: 1, 8, 128>}, {transform_indices = @transform_2, window_bounds = array<i64: 1, 8, 128>}, {transform_indices = @transform_3, window_bounds = array<i64: 1, 8, 128>}, {pipeline_mode = #tpu.pipeline_mode<synchronous>, transform_indices = @transform_4, window_bounds = array<i64: 8, 128>}, {pipeline_mode = #tpu.pipeline_mode<synchronous>, transform_indices = @transform_5, window_bounds = array<i64: 8, 128>}, {pipeline_mode = #tpu.pipeline_mode<synchronous>, transform_indices = @transform_6, window_bounds = array<i64: 128, 128>}, {pipeline_mode = #tpu.pipeline_mode<synchronous>, transform_indices = @transform_7, window_bounds = array<i64: 128, 128>}, {transform_indices = @transform_8, window_bounds = array<i64: 1, 8, 128>}]} {
    %c0 = arith.constant 0 : index
    %c0_0 = arith.constant 0 : index
    %c0_1 = arith.constant 0 : index
    %0 = vector.load %arg2[%c0, %c0_0, %c0_1] : memref<1x8x128xf32, #tpu.memory_space<vmem>>, vector<1x8x128xf32>
    %1 = vector.shape_cast %0 : vector<1x8x128xf32> to vector<8x128xf32>
    %c0_2 = arith.constant 0 : index
    %c0_3 = arith.constant 0 : index
    %c0_4 = arith.constant 0 : index
    %2 = vector.load %arg3[%c0_2, %c0_3, %c0_4] : memref<1x8x128xf32, #tpu.memory_space<vmem>>, vector<1x8x128xf32>
    %3 = vector.shape_cast %2 : vector<1x8x128xf32> to vector<8x128xf32>
    %c0_5 = arith.constant 0 : index
    %c0_6 = arith.constant 0 : index
    %c0_7 = arith.constant 0 : index
    %4 = vector.load %arg4[%c0_5, %c0_6, %c0_7] : memref<1x8x128xf32, #tpu.memory_space<vmem>>, vector<1x8x128xf32>
    %5 = vector.shape_cast %4 : vector<1x8x128xf32> to vector<8x128xf32>
    %c0_8 = arith.constant 0 : index
    %c0_9 = arith.constant 0 : index
    %6 = vector.load %arg5[%c0_8, %c0_9] : memref<8x128xf32, #tpu.memory_space<vmem>>, vector<8x128xf32>
    %c0_10 = arith.constant 0 : index
    %c0_11 = arith.constant 0 : index
    %7 = vector.load %arg6[%c0_10, %c0_11] : memref<8x128xf32, #tpu.memory_space<vmem>>, vector<8x128xf32>
    %c0_12 = arith.constant 0 : index
    %c0_13 = arith.constant 0 : index
    %8 = vector.load %arg7[%c0_12, %c0_13] : memref<128x128xf32, #tpu.memory_space<vmem>>, vector<128x128xf32>
    %9 = arith.mulf %1, %6 : vector<8x128xf32>
    %cst = arith.constant dense<0.000000e+00> : vector<8x128xf32>
    %10 = tpu.matmul %1, %8, %cst {dimension_numbers = #tpu.dot_dimension_numbers<[1], [0], [0], [1], [0, 0, 1, 1], [], []>} : vector<8x128xf32>, vector<128x128xf32>, vector<8x128xf32> -> vector<8x128xf32>
    %11 = arith.mulf %10, %7 : vector<8x128xf32>
    %12 = arith.addf %9, %11 : vector<8x128xf32>
    %13 = arith.mulf %3, %6 : vector<8x128xf32>
    %cst_14 = arith.constant dense<0.000000e+00> : vector<8x128xf32>
    %14 = tpu.matmul %3, %8, %cst_14 {dimension_numbers = #tpu.dot_dimension_numbers<[1], [0], [0], [1], [0, 0, 1, 1], [], []>} : vector<8x128xf32>, vector<128x128xf32>, vector<8x128xf32> -> vector<8x128xf32>
    %15 = arith.mulf %14, %7 : vector<8x128xf32>
    %16 = arith.addf %13, %15 : vector<8x128xf32>
    %17 = tpu.iota {dimensions = array<i32: 0>} : vector<8x8xi32>
    %18 = tpu.iota {dimensions = array<i32: 1>} : vector<8x8xi32>
    %19 = arith.cmpi sle, %18, %17 : vector<8x8xi32>
    %20 = vector.extract_strided_slice %12 {offsets = [0, 0], sizes = [8, 32], strides = [1, 1]} : vector<8x128xf32> to vector<8x32xf32>
    %21 = vector.extract_strided_slice %16 {offsets = [0, 0], sizes = [8, 32], strides = [1, 1]} : vector<8x128xf32> to vector<8x32xf32>
    %22 = vector.extract_strided_slice %5 {offsets = [0, 0], sizes = [8, 32], strides = [1, 1]} : vector<8x128xf32> to vector<8x32xf32>
    %cst_15 = arith.constant dense<0.000000e+00> : vector<8x8xf32>
    %23 = tpu.matmul %20, %21, %cst_15 {dimension_numbers = #tpu.dot_dimension_numbers<[1], [1], [0], [0], [0, 0, 1, 0], [], []>} : vector<8x32xf32>, vector<8x32xf32>, vector<8x8xf32> -> vector<8x8xf32>
    %cst_16 = arith.constant 0.176776692 : f32
    %24 = vector.broadcast %cst_16 : f32 to vector<8x8xf32>
    %25 = arith.mulf %23, %24 : vector<8x8xf32>
    %cst_17 = arith.constant -1.000000e+30 : f32
    %26 = vector.broadcast %cst_17 : f32 to vector<8x8xf32>
    %27 = arith.select %19, %25, %26 : vector<8x8xi1>, vector<8x8xf32>
    %cst_18 = arith.constant dense<0xFF800000> : vector<8xf32>
    %28 = vector.multi_reduction <maximumf>, %27, %cst_18 [1] : vector<8x8xf32> to vector<8xf32>
    %29 = vector.shape_cast %28 : vector<8xf32> to vector<8x1xf32>
    %30 = vector.broadcast %29 : vector<8x1xf32> to vector<8x8xf32>
    %31 = arith.subf %27, %30 : vector<8x8xf32>
    %32 = math.exp %31 : vector<8x8xf32>
    %cst_19 = arith.constant dense<0.000000e+00> : vector<8xf32>
    %33 = vector.multi_reduction <add>, %32, %cst_19 [1] : vector<8x8xf32> to vector<8xf32>
    %34 = vector.shape_cast %33 : vector<8xf32> to vector<8x1xf32>
    %35 = tpu.reciprocal %34 {approx = true} : vector<8x1xf32> -> vector<8x1xf32>
    %36 = vector.broadcast %35 : vector<8x1xf32> to vector<8x8xf32>
    %37 = arith.mulf %32, %36 : vector<8x8xf32>
    %cst_20 = arith.constant dense<0.000000e+00> : vector<8x32xf32>
    %38 = tpu.matmul %37, %22, %cst_20 {dimension_numbers = #tpu.dot_dimension_numbers<[1], [0], [0], [1], [0, 0, 1, 1], [], []>} : vector<8x8xf32>, vector<8x32xf32>, vector<8x32xf32> -> vector<8x32xf32>
    %39 = vector.extract_strided_slice %12 {offsets = [0, 32], sizes = [8, 32], strides = [1, 1]} : vector<8x128xf32> to vector<8x32xf32>
    %40 = vector.extract_strided_slice %16 {offsets = [0, 32], sizes = [8, 32], strides = [1, 1]} : vector<8x128xf32> to vector<8x32xf32>
    %41 = vector.extract_strided_slice %5 {offsets = [0, 32], sizes = [8, 32], strides = [1, 1]} : vector<8x128xf32> to vector<8x32xf32>
    %cst_21 = arith.constant dense<0.000000e+00> : vector<8x8xf32>
    %42 = tpu.matmul %39, %40, %cst_21 {dimension_numbers = #tpu.dot_dimension_numbers<[1], [1], [0], [0], [0, 0, 1, 0], [], []>} : vector<8x32xf32>, vector<8x32xf32>, vector<8x8xf32> -> vector<8x8xf32>
    %cst_22 = arith.constant 0.176776692 : f32
    %43 = vector.broadcast %cst_22 : f32 to vector<8x8xf32>
    %44 = arith.mulf %42, %43 : vector<8x8xf32>
    %cst_23 = arith.constant -1.000000e+30 : f32
    %45 = vector.broadcast %cst_23 : f32 to vector<8x8xf32>
    %46 = arith.select %19, %44, %45 : vector<8x8xi1>, vector<8x8xf32>
    %cst_24 = arith.constant dense<0xFF800000> : vector<8xf32>
    %47 = vector.multi_reduction <maximumf>, %46, %cst_24 [1] : vector<8x8xf32> to vector<8xf32>
    %48 = vector.shape_cast %47 : vector<8xf32> to vector<8x1xf32>
    %49 = vector.broadcast %48 : vector<8x1xf32> to vector<8x8xf32>
    %50 = arith.subf %46, %49 : vector<8x8xf32>
    %51 = math.exp %50 : vector<8x8xf32>
    %cst_25 = arith.constant dense<0.000000e+00> : vector<8xf32>
    %52 = vector.multi_reduction <add>, %51, %cst_25 [1] : vector<8x8xf32> to vector<8xf32>
    %53 = vector.shape_cast %52 : vector<8xf32> to vector<8x1xf32>
    %54 = tpu.reciprocal %53 {approx = true} : vector<8x1xf32> -> vector<8x1xf32>
    %55 = vector.broadcast %54 : vector<8x1xf32> to vector<8x8xf32>
    %56 = arith.mulf %51, %55 : vector<8x8xf32>
    %cst_26 = arith.constant dense<0.000000e+00> : vector<8x32xf32>
    %57 = tpu.matmul %56, %41, %cst_26 {dimension_numbers = #tpu.dot_dimension_numbers<[1], [0], [0], [1], [0, 0, 1, 1], [], []>} : vector<8x8xf32>, vector<8x32xf32>, vector<8x32xf32> -> vector<8x32xf32>
    %58 = vector.extract_strided_slice %12 {offsets = [0, 64], sizes = [8, 32], strides = [1, 1]} : vector<8x128xf32> to vector<8x32xf32>
    %59 = vector.extract_strided_slice %16 {offsets = [0, 64], sizes = [8, 32], strides = [1, 1]} : vector<8x128xf32> to vector<8x32xf32>
    %60 = vector.extract_strided_slice %5 {offsets = [0, 64], sizes = [8, 32], strides = [1, 1]} : vector<8x128xf32> to vector<8x32xf32>
    %cst_27 = arith.constant dense<0.000000e+00> : vector<8x8xf32>
    %61 = tpu.matmul %58, %59, %cst_27 {dimension_numbers = #tpu.dot_dimension_numbers<[1], [1], [0], [0], [0, 0, 1, 0], [], []>} : vector<8x32xf32>, vector<8x32xf32>, vector<8x8xf32> -> vector<8x8xf32>
    %cst_28 = arith.constant 0.176776692 : f32
    %62 = vector.broadcast %cst_28 : f32 to vector<8x8xf32>
    %63 = arith.mulf %61, %62 : vector<8x8xf32>
    %cst_29 = arith.constant -1.000000e+30 : f32
    %64 = vector.broadcast %cst_29 : f32 to vector<8x8xf32>
    %65 = arith.select %19, %63, %64 : vector<8x8xi1>, vector<8x8xf32>
    %cst_30 = arith.constant dense<0xFF800000> : vector<8xf32>
    %66 = vector.multi_reduction <maximumf>, %65, %cst_30 [1] : vector<8x8xf32> to vector<8xf32>
    %67 = vector.shape_cast %66 : vector<8xf32> to vector<8x1xf32>
    %68 = vector.broadcast %67 : vector<8x1xf32> to vector<8x8xf32>
    %69 = arith.subf %65, %68 : vector<8x8xf32>
    %70 = math.exp %69 : vector<8x8xf32>
    %cst_31 = arith.constant dense<0.000000e+00> : vector<8xf32>
    %71 = vector.multi_reduction <add>, %70, %cst_31 [1] : vector<8x8xf32> to vector<8xf32>
    %72 = vector.shape_cast %71 : vector<8xf32> to vector<8x1xf32>
    %73 = tpu.reciprocal %72 {approx = true} : vector<8x1xf32> -> vector<8x1xf32>
    %74 = vector.broadcast %73 : vector<8x1xf32> to vector<8x8xf32>
    %75 = arith.mulf %70, %74 : vector<8x8xf32>
    %cst_32 = arith.constant dense<0.000000e+00> : vector<8x32xf32>
    %76 = tpu.matmul %75, %60, %cst_32 {dimension_numbers = #tpu.dot_dimension_numbers<[1], [0], [0], [1], [0, 0, 1, 1], [], []>} : vector<8x8xf32>, vector<8x32xf32>, vector<8x32xf32> -> vector<8x32xf32>
    %77 = vector.extract_strided_slice %12 {offsets = [0, 96], sizes = [8, 32], strides = [1, 1]} : vector<8x128xf32> to vector<8x32xf32>
    %78 = vector.extract_strided_slice %16 {offsets = [0, 96], sizes = [8, 32], strides = [1, 1]} : vector<8x128xf32> to vector<8x32xf32>
    %79 = vector.extract_strided_slice %5 {offsets = [0, 96], sizes = [8, 32], strides = [1, 1]} : vector<8x128xf32> to vector<8x32xf32>
    %cst_33 = arith.constant dense<0.000000e+00> : vector<8x8xf32>
    %80 = tpu.matmul %77, %78, %cst_33 {dimension_numbers = #tpu.dot_dimension_numbers<[1], [1], [0], [0], [0, 0, 1, 0], [], []>} : vector<8x32xf32>, vector<8x32xf32>, vector<8x8xf32> -> vector<8x8xf32>
    %cst_34 = arith.constant 0.176776692 : f32
    %81 = vector.broadcast %cst_34 : f32 to vector<8x8xf32>
    %82 = arith.mulf %80, %81 : vector<8x8xf32>
    %cst_35 = arith.constant -1.000000e+30 : f32
    %83 = vector.broadcast %cst_35 : f32 to vector<8x8xf32>
    %84 = arith.select %19, %82, %83 : vector<8x8xi1>, vector<8x8xf32>
    %cst_36 = arith.constant dense<0xFF800000> : vector<8xf32>
    %85 = vector.multi_reduction <maximumf>, %84, %cst_36 [1] : vector<8x8xf32> to vector<8xf32>
    %86 = vector.shape_cast %85 : vector<8xf32> to vector<8x1xf32>
    %87 = vector.broadcast %86 : vector<8x1xf32> to vector<8x8xf32>
    %88 = arith.subf %84, %87 : vector<8x8xf32>
    %89 = math.exp %88 : vector<8x8xf32>
    %cst_37 = arith.constant dense<0.000000e+00> : vector<8xf32>
    %90 = vector.multi_reduction <add>, %89, %cst_37 [1] : vector<8x8xf32> to vector<8xf32>
    %91 = vector.shape_cast %90 : vector<8xf32> to vector<8x1xf32>
    %92 = tpu.reciprocal %91 {approx = true} : vector<8x1xf32> -> vector<8x1xf32>
    %93 = vector.broadcast %92 : vector<8x1xf32> to vector<8x8xf32>
    %94 = arith.mulf %89, %93 : vector<8x8xf32>
    %cst_38 = arith.constant dense<0.000000e+00> : vector<8x32xf32>
    %95 = tpu.matmul %94, %79, %cst_38 {dimension_numbers = #tpu.dot_dimension_numbers<[1], [0], [0], [1], [0, 0, 1, 1], [], []>} : vector<8x8xf32>, vector<8x32xf32>, vector<8x32xf32> -> vector<8x32xf32>
    %96 = tpu.concatenate %38, %57, %76, %95 in 1 : vector<8x32xf32>, vector<8x32xf32>, vector<8x32xf32>, vector<8x32xf32> -> vector<8x128xf32>
    %c0_39 = arith.constant 0 : index
    %c0_40 = arith.constant 0 : index
    %97 = vector.load %arg8[%c0_39, %c0_40] : memref<128x128xf32, #tpu.memory_space<vmem>>, vector<128x128xf32>
    %cst_41 = arith.constant dense<0.000000e+00> : vector<8x128xf32>
    %98 = tpu.matmul %96, %97, %cst_41 {dimension_numbers = #tpu.dot_dimension_numbers<[1], [0], [0], [1], [0, 0, 1, 1], [], []>} : vector<8x128xf32>, vector<128x128xf32>, vector<8x128xf32> -> vector<8x128xf32>
    %c0_42 = arith.constant 0 : index
    %c0_43 = arith.constant 0 : index
    %c0_44 = arith.constant 0 : index
    %99 = vector.load %arg1[%c0_42, %c0_43, %c0_44] : memref<1x8x128xf32, #tpu.memory_space<vmem>>, vector<1x8x128xf32>
    %100 = vector.shape_cast %99 : vector<1x8x128xf32> to vector<8x128xf32>
    %101 = arith.addf %100, %98 : vector<8x128xf32>
    %c0_45 = arith.constant 0 : index
    %c0_46 = arith.constant 0 : index
    %c0_47 = arith.constant 0 : index
    %102 = vector.load %arg9[%c0_45, %c0_46, %c0_47] : memref<1x8x128xf32, #tpu.memory_space<vmem>>, vector<1x8x128xf32>
    %103 = vector.shape_cast %102 : vector<1x8x128xf32> to vector<8x128xf32>
    %104 = vector.shape_cast %101 : vector<8x128xf32> to vector<1x8x128xf32>
    tpu.vector_store %arg9[%c0_45, %c0_46, %c0_47], %104 {strides = array<i32>} : memref<1x8x128xf32, #tpu.memory_space<vmem>>, vector<1x8x128xf32>,
    return
  }
  func.func @transform_0(%arg0: i32) -> (i32, i32, i32) {
    %c0_i32 = arith.constant 0 : i32
    %c0_i32_0 = arith.constant 0 : i32
    %c0_i32_1 = arith.constant 0 : i32
    return %arg0, %c0_i32, %c0_i32_0 : i32, i32, i32
  }
  func.func @transform_1(%arg0: i32) -> (i32, i32, i32) {
    %c0_i32 = arith.constant 0 : i32
    %c0_i32_0 = arith.constant 0 : i32
    %c0_i32_1 = arith.constant 0 : i32
    return %arg0, %c0_i32, %c0_i32_0 : i32, i32, i32
  }
  func.func @transform_2(%arg0: i32) -> (i32, i32, i32) {
    %c0_i32 = arith.constant 0 : i32
    %c0_i32_0 = arith.constant 0 : i32
    %c0_i32_1 = arith.constant 0 : i32
    return %arg0, %c0_i32, %c0_i32_0 : i32, i32, i32
  }
  func.func @transform_3(%arg0: i32) -> (i32, i32, i32) {
    %c0_i32 = arith.constant 0 : i32
    %c0_i32_0 = arith.constant 0 : i32
    %c0_i32_1 = arith.constant 0 : i32
    return %arg0, %c0_i32, %c0_i32_0 : i32, i32, i32
  }
  func.func @transform_4(%arg0: i32) -> (i32, i32) {
    %c0_i32 = arith.constant 0 : i32
    %c0_i32_0 = arith.constant 0 : i32
    %c0_i32_1 = arith.constant 0 : i32
    return %c0_i32, %c0_i32_0 : i32, i32
  }
  func.func @transform_5(%arg0: i32) -> (i32, i32) {
    %c0_i32 = arith.constant 0 : i32
    %c0_i32_0 = arith.constant 0 : i32
    %c0_i32_1 = arith.constant 0 : i32
    return %c0_i32, %c0_i32_0 : i32, i32
  }
  func.func @transform_6(%arg0: i32) -> (i32, i32) {
    %c0_i32 = arith.constant 0 : i32
    %c0_i32_0 = arith.constant 0 : i32
    %c0_i32_1 = arith.constant 0 : i32
    return %c0_i32, %c0_i32_0 : i32, i32
  }
  func.func @transform_7(%arg0: i32) -> (i32, i32) {
    %c0_i32 = arith.constant 0 : i32
    %c0_i32_0 = arith.constant 0 : i32
    %c0_i32_1 = arith.constant 0 : i32
    return %c0_i32, %c0_i32_0 : i32, i32
  }
  func.func @transform_8(%arg0: i32) -> (i32, i32, i32) {
    %c0_i32 = arith.constant 0 : i32
    %c0_i32_0 = arith.constant 0 : i32
    %c0_i32_1 = arith.constant 0 : i32
    return %arg0, %c0_i32, %c0_i32_0 : i32, i32, i32
  }
}

</mosaic_0001>

<bundles_post_ra>
// kernel: tile.14
= control target key start
LH: loop header
LB: loop body
LE: loop exit
PB: predicated region body
PF: predicated region fallthrough
CT: control target
= control target key end

     0   :  { %vm36_vm0 = vcmask 1047556   ;;  %s81_s22 = smov 32   ;;  %s82_s23 = smov 64   ;;  %vm38_vm1 = vcmask 261120   ;;  %vm48_vm2 = vcmask 1048320   ;;  %vm58_vm3 = vcmask 785920   ;;  %s133_s0 = inlined_call_operand.vmem [shape: f32[8,4,32], index: 0, kind: input, shape index: {}]   ;;  %s134_s1 = inlined_call_operand.vmem [shape: f32[8,128], index: 1, kind: output, shape index: {}]  }
   0x1   :  { %v70_v0 = vld [vmem:[%s133_s0 + $0x1c] sm:$0xf]  ;;  %v71_v1 = vld [vmem:[%s133_s0 + $0x18] sm:$0xf]  ;;  %v72_v2 = vld [vmem:[%s133_s0 + $0x14] sm:$0xf] }
   0x2   :  { %7 = vst [vmem:[#allocation0 + $0x38] sm:$0xf] %v70_v0  ;;  %v73_v3 = vld [vmem:[%s133_s0 + $0x10] sm:$0xf]  ;;  %v74_v4 = vld [vmem:[%s133_s0 + $0xc] sm:$0xf] }
   0x3   :  { %11 = vst [vmem:[#allocation0 + $0x30] sm:$0xf] %v71_v1  ;;  %v75_v5 = vld [vmem:[%s133_s0 + $0x8] sm:$0xf]  ;;  %v76_v6 = vld [vmem:[%s133_s0 + $0x4] sm:$0xf] }
   0x4   :  { %15 = vst [vmem:[#allocation0 + $0x28] sm:$0xf] %v72_v2  ;;  %v32_v7 = vld [vmem:[%s133_s0] sm:$0xf]  ;;  %s80_s0 = smov 96   ;;  %vm68_vm4 = vcmask 523520  }
   0x5   :  { %19 = vst [vmem:[#allocation0 + $0x20] sm:$0xf] %v73_v3 }
   0x6   :  { %23 = vst [vmem:[#allocation0 + $0x18] sm:$0xf] %v74_v4 }
   0x7   :  { %27 = vst [vmem:[#allocation0 + $0x10] sm:$0xf] %v75_v5 }
   0x8   :  { %31 = vst [vmem:[#allocation0 + $0x8] sm:$0xf] %v76_v6 }
   0x9   :  { %33 = vst [vmem:[#allocation0] sm:$0xf] %v32_v7 }
   0xc   :  { %v43_v8 = vld [vmem:[#allocation0 + $0x3] ss:$8 sm:$0xf0]   ;;  %v63_v9 = vld [vmem:[#allocation0 + $0x1] ss:$8 sm:$0xf0]  }
   0xd   :  { %v53_v15 = vld [vmem:[#allocation0 + $0x2] ss:$8 sm:$0xf0]   ;;  %v35_v18 = vld [vmem:[#allocation0] ss:$8 sm:$0xf0]  }
  0x10   :  { %v41_v10 = vld [vmem:[#allocation0 + $0x3] ss:$8 sm:$0xf]   ;;  %v61_v12 = vld [vmem:[#allocation0 + $0x1] ss:$8 sm:$0xf]  }
  0x11   :  { %v45_v11 = vsel %vm36_vm0, %v43_v8, %v41_v10  ;;  %v65_v13 = vsel %vm36_vm0, %v63_v9, %v61_v12  ;;  %v51_v14 = vld [vmem:[#allocation0 + $0x2] ss:$8 sm:$0xf]   ;;  %v34_v17 = vld [vmem:[#allocation0] ss:$8 sm:$0xf]  }
  0x12   :  { %46 = vrot.lane.b32.xlu0 %v45_v11, %s80_s0  ;;  %66 = vrot.lane.b32.xlu1 %v65_v13, %s81_s22  ;;  %v55_v16 = vsel %vm36_vm0, %v53_v15, %v51_v14  ;;  %v37_v19 = vsel %vm36_vm0, %v35_v18, %v34_v17 }
  0x13   :  { %39 = vst.msk [vmem:[%s134_s1] sm:$0xff] %vm38_vm1, %v37_v19  }
  0x1a   :  { %56 = vrot.lane.b32.xlu0 %v55_v16, %s82_s23 }
  0x84   :  { %v47_v20 = vpop.permute.xlu0 %46   ;;  %v67_v21 = vpop.permute.xlu1 %66  }
  0x85   :  { %49 = vst.msk [vmem:[%s134_s1] sm:$0xff] %vm48_vm2, %v47_v20  }
  0x8c   :  { %v57_v22 = vpop.permute.xlu0 %56  }
  0x8d   :  { %59 = vst.msk [vmem:[%s134_s1] sm:$0xff] %vm58_vm3, %v57_v22  }
  0x8e   :  { %69 = vst.msk [vmem:[%s134_s1] sm:$0xff] %vm68_vm4, %v67_v21  }

// kernel: _lambda_.3
= control target key start
LH: loop header
LB: loop body
LE: loop exit
PB: predicated region body
PF: predicated region fallthrough
CT: control target
= control target key end

     0   :  { %v223_v19 = vmov 128.0   ;;  %s442_s0 = inlined_call_operand.vmem [shape: f32[16,128], index: 0, kind: input, shape index: {}]   ;;  %s443_s2 = inlined_call_operand.vmem [shape: f32[128,384], index: 2, kind: input, shape index: {}]   ;;  %s444_s1 = inlined_call_operand.vmem [shape: f32[1,128], index: 1, kind: input, shape index: {}]   ;;  %s445_s3 = inlined_call_operand.vmem [shape: f32[16,128], index: 3, kind: output, shape index: {0}]   ;;  %s446_s4 = inlined_call_operand.vmem [shape: f32[16,128], index: 4, kind: output, shape index: {1}]   ;;  %s447_s5 = inlined_call_operand.vmem [shape: f32[16,128], index: 5, kind: output, shape index: {2}]  }
   0x1   :  { %v257_v0 = vld [vmem:[%s442_s0] sm:$0xff]  ;;  %v109_v1 = vld [vmem:[%s443_s2 + $0x168] sm:$0xff]  ;;  %v110_v3 = vld [vmem:[%s443_s2 + $0x170] sm:$0xff]  ;;  %217 = vrcp.f32 %v223_v19 }
   0x2   :  { %v19_v2 = vmul.f32 %v257_v0, %v257_v0  ;;  %112 = vmatpush.msra.mxu0 %v109_v1  ;;  %v111_v4 = vld [vmem:[%s443_s2 + $0x178] sm:$0xff]  ;;  %v106_v5 = vld [vmem:[%s443_s2 + $0x150] sm:$0xff]  ;;  %199 = vmatpush.msra.mxu3 %v109_v1  ;;  %v108_v7 = vld [vmem:[%s443_s2 + $0x160] sm:$0xff] }
   0x3   :  { %135 = vmatpush.msra.mxu1 %v110_v3  ;;  %158 = vmatpush.msra.mxu2 %v111_v4  ;;  %v107_v6 = vld [vmem:[%s443_s2 + $0x158] sm:$0xff]  ;;  %v104_v9 = vld [vmem:[%s443_s2 + $0x140] sm:$0xff]  ;;  %v105_v10 = vld [vmem:[%s443_s2 + $0x148] sm:$0xff] }
   0x4   :  { %v103_v8 = vld [vmem:[%s443_s2 + $0x138] sm:$0xff]  ;;  %21 = vadd.xlane.f32.xlu0 %v19_v2  ;;  %113 = vmatpush.msra.mxu0 %v106_v5  ;;  %v291_v11 = vld [vmem:[%s442_s0 + $0x8] sm:$0xff]  ;;  %v100_v13 = vld [vmem:[%s443_s2 + $0x120] sm:$0xff] }
   0x5   :  { %136 = vmatpush.msra.mxu1 %v107_v6  ;;  %159 = vmatpush.msra.mxu2 %v108_v7  ;;  %v20_v12 = vmul.f32 %v291_v11, %v291_v11  ;;  %v101_v14 = vld [vmem:[%s443_s2 + $0x128] sm:$0xff]  ;;  %v102_v15 = vld [vmem:[%s443_s2 + $0x130] sm:$0xff]  ;;  %v99_v18 = vld [vmem:[%s443_s2 + $0x118] sm:$0xff] }
   0x6   :  { %114 = vmatpush.msra.mxu0 %v103_v8  ;;  %200 = vmatpush.msra.mxu3 %v106_v5  ;;  %v97_v16 = vld [vmem:[%s443_s2 + $0x108] sm:$0xff]  ;;  %v98_v17 = vld [vmem:[%s443_s2 + $0x110] sm:$0xff]  ;;  %v95_v21 = vld [vmem:[%s443_s2 + $0xf8] sm:$0xff] }
   0x7   :  { %137 = vmatpush.msra.mxu1 %v104_v9  ;;  %160 = vmatpush.msra.mxu2 %v105_v10  ;;  %v94_v20 = vld [vmem:[%s443_s2 + $0xf0] sm:$0xff]  ;;  %v96_v22 = vld [vmem:[%s443_s2 + $0x100] sm:$0xff]  ;;  %v91_v23 = vld [vmem:[%s443_s2 + $0xd8] sm:$0xff]  ;;  %v340_v29 = vpop.eup %217 }
   0x8   :  { %201 = vmatpush.msra.mxu3 %v103_v8  ;;  %115 = vmatpush.msra.mxu0 %v100_v13  ;;  %v92_v24 = vld [vmem:[%s443_s2 + $0xe0] sm:$0xff]  ;;  %v93_v25 = vld [vmem:[%s443_s2 + $0xe8] sm:$0xff]  ;;  %v90_v28 = vld [vmem:[%s443_s2 + $0xd0] sm:$0xff]  ;;  %v26_v36 = vmul.f32 128.0, %v340_v29  ;;  %vm30_vm0 = vweird.f32 %v340_v29 }
   0x9   :  { %138 = vmatpush.msra.mxu1 %v101_v14  ;;  %161 = vmatpush.msra.mxu2 %v102_v15  ;;  %v88_v26 = vld [vmem:[%s443_s2 + $0xc0] sm:$0xff]  ;;  %v89_v27 = vld [vmem:[%s443_s2 + $0xc8] sm:$0xff]  ;;  %v86_v31 = vld [vmem:[%s443_s2 + $0xb0] sm:$0xff] }
   0xa   :  { %202 = vmatpush.msra.mxu3 %v100_v13  ;;  %116 = vmatpush.msra.mxu0 %v97_v16  ;;  %v85_v30 = vld [vmem:[%s443_s2 + $0xa8] sm:$0xff]  ;;  %v87_v32 = vld [vmem:[%s443_s2 + $0xb8] sm:$0xff]  ;;  %v82_v33 = vld [vmem:[%s443_s2 + $0x90] sm:$0xff]  ;;  %v27_v43 = vsub.f32 1.0, %v26_v36 }
   0xb   :  { %139 = vmatpush.msra.mxu1 %v98_v17  ;;  %162 = vmatpush.msra.mxu2 %v99_v18  ;;  %v83_v34 = vld [vmem:[%s443_s2 + $0x98] sm:$0xff]  ;;  %v84_v35 = vld [vmem:[%s443_s2 + $0xa0] sm:$0xff]  ;;  %v81_v39 = vld [vmem:[%s443_s2 + $0x88] sm:$0xff] }
   0xc   :  { %23 = vadd.xlane.f32.xlu0 %v20_v12  ;;  %203 = vmatpush.msra.mxu3 %v97_v16  ;;  %v79_v37 = vld [vmem:[%s443_s2 + $0x78] sm:$0xff]  ;;  %v80_v38 = vld [vmem:[%s443_s2 + $0x80] sm:$0xff]  ;;  %v77_v41 = vld [vmem:[%s443_s2 + $0x68] sm:$0xff]  ;;  %v28_v50 = vmul.f32 %v340_v29, %v27_v43 }
   0xd   :  { %117 = vmatpush.msra.mxu0 %v94_v20  ;;  %140 = vmatpush.msra.mxu1 %v95_v21  ;;  %v76_v40 = vld [vmem:[%s443_s2 + $0x60] sm:$0xff]  ;;  %v78_v42 = vld [vmem:[%s443_s2 + $0x70] sm:$0xff]  ;;  %v73_v44 = vld [vmem:[%s443_s2 + $0x48] sm:$0xff] }
   0xe   :  { %163 = vmatpush.msra.mxu2 %v96_v22  ;;  %204 = vmatpush.msra.mxu3 %v94_v20  ;;  %v74_v45 = vld [vmem:[%s443_s2 + $0x50] sm:$0xff]  ;;  %v75_v46 = vld [vmem:[%s443_s2 + $0x58] sm:$0xff]  ;;  %v72_v49 = vld [vmem:[%s443_s2 + $0x40] sm:$0xff]  ;;  %v29_v57 = vadd.f32 %v340_v29, %v28_v50 }
   0xf   :  { %118 = vmatpush.msra.mxu0 %v91_v23  ;;  %141 = vmatpush.msra.mxu1 %v92_v24  ;;  %v70_v47 = vld [vmem:[%s443_s2 + $0x30] sm:$0xff]  ;;  %v71_v48 = vld [vmem:[%s443_s2 + $0x38] sm:$0xff]  ;;  %v68_v52 = vld [vmem:[%s443_s2 + $0x20] sm:$0xff] }
  0x10   :  { %164 = vmatpush.msra.mxu2 %v93_v25  ;;  %205 = vmatpush.msra.mxu3 %v91_v23  ;;  %v67_v51 = vld [vmem:[%s443_s2 + $0x18] sm:$0xff]  ;;  %v69_v53 = vld [vmem:[%s443_s2 + $0x28] sm:$0xff]  ;;  %v64_v54 = vld [vmem:[%s443_s2] sm:$0xff]  ;;  %v31_v58 = vsel %vm30_vm0, %v340_v29, %v29_v57 }
  0x11   :  { %119 = vmatpush.msra.mxu0 %v88_v26  ;;  %142 = vmatpush.msra.mxu1 %v89_v27  ;;  %v65_v55 = vld [vmem:[%s443_s2 + $0x8] sm:$0xff]  ;;  %v66_v56 = vld [vmem:[%s443_s2 + $0x10] sm:$0xff]  ;;  %v216_v10 = vld [vmem:[%s444_s1] ss:$0 sm:$0xff] }
  0x12   :  { %165 = vmatpush.msra.mxu2 %v90_v28  ;;  %206 = vmatpush.msra.mxu3 %v88_v26 }
  0x13   :  { %120 = vmatpush.msra.mxu0 %v85_v30  ;;  %143 = vmatpush.msra.mxu1 %v86_v31 }
  0x14   :  { %166 = vmatpush.msra.mxu2 %v87_v32  ;;  %207 = vmatpush.msra.mxu3 %v85_v30 }
  0x15   :  { %121 = vmatpush.msra.mxu0 %v82_v33  ;;  %144 = vmatpush.msra.mxu1 %v83_v34 }
  0x16   :  { %167 = vmatpush.msra.mxu2 %v84_v35  ;;  %208 = vmatpush.msra.mxu3 %v82_v33 }
  0x17   :  { %122 = vmatpush.msra.mxu0 %v79_v37  ;;  %145 = vmatpush.msra.mxu1 %v80_v38 }
  0x18   :  { %168 = vmatpush.msra.mxu2 %v81_v39  ;;  %209 = vmatpush.msra.mxu3 %v79_v37 }
  0x19   :  { %123 = vmatpush.msra.mxu0 %v76_v40  ;;  %146 = vmatpush.msra.mxu1 %v77_v41 }
  0x1a   :  { %169 = vmatpush.msra.mxu2 %v78_v42  ;;  %210 = vmatpush.msra.mxu3 %v76_v40 }
  0x1b   :  { %124 = vmatpush.msra.mxu0 %v73_v44  ;;  %147 = vmatpush.msra.mxu1 %v74_v45 }
  0x1c   :  { %170 = vmatpush.msra.mxu2 %v75_v46  ;;  %211 = vmatpush.msra.mxu3 %v73_v44 }
  0x1d   :  { %125 = vmatpush.msra.mxu0 %v70_v47  ;;  %148 = vmatpush.msra.mxu1 %v71_v48 }
  0x1e   :  { %171 = vmatpush.msra.mxu2 %v72_v49  ;;  %212 = vmatpush.msra.mxu3 %v70_v47 }
  0x1f   :  { %126 = vmatpush.msra.mxu0 %v67_v51  ;;  %149 = vmatpush.msra.mxu1 %v68_v52 }
  0x20   :  { %172 = vmatpush.msra.mxu2 %v69_v53  ;;  %213 = vmatpush.msra.mxu3 %v67_v51 }
  0x21   :  { %127 = vmatpush.msra.mxu0 %v64_v54  ;;  %150 = vmatpush.msra.mxu1 %v65_v55 }
  0x22   :  { %173 = vmatpush.msra.mxu2 %v66_v56  ;;  %214 = vmatpush.msra.mxu3 %v64_v54 }
  0x77   :  { %v22_v59 = vpop.xlane.xlu0 %21 }
  0x78   :  { %v32_v60 = vmul.f32 %v31_v58, %v22_v59 }
  0x7a   :  { %v34_v61 = vadd.f32 1e-06, %v32_v60 }
  0x7c   :  { %219 = vrsqrt.f32 %v34_v61  ;;  %vm42_vm2 = vweird.f32 %v34_v61 }
  0x7f   :  { %v24_v62 = vpop.xlane.xlu0 %23 }
  0x80   :  { %v33_v63 = vmul.f32 %v31_v58, %v24_v62 }
  0x82   :  { %v220_v1 = vpop.eup %219  ;;  %v35_v2 = vadd.f32 1e-06, %v33_v63 }
  0x83   :  { %v37_v3 = vmul.f32 %v220_v1, %v34_v61  ;;  %vm43_vm1 = vweird.f32 %v220_v1 }
  0x84   :  { %221 = vrsqrt.f32 %v35_v2  ;;  %vm44_vm3 = vmor %vm42_vm2, %vm43_vm1  ;;  %vm52_vm5 = vweird.f32 %v35_v2 }
  0x85   :  { %v38_v4 = vmul.f32 %v220_v1, %v37_v3 }
  0x87   :  { %v39_v5 = vmul.f32 0.5, %v38_v4 }
  0x89   :  { %v40_v6 = vsub.f32 1.5, %v39_v5 }
  0x8a   :  { %v222_v7 = vpop.eup %221 }
  0x8b   :  { %v41_v8 = vmul.f32 %v220_v1, %v40_v6  ;;  %v47_v9 = vmul.f32 %v222_v7, %v35_v2  ;;  %vm53_vm4 = vweird.f32 %v222_v7 }
  0x8c   :  { %vm54_vm6 = vmor %vm52_vm5, %vm53_vm4 }
  0x8d   :  { %v48_v12 = vmul.f32 %v222_v7, %v47_v9  ;;  %v45_v13 = vsel %vm44_vm3, %v220_v1, %v41_v8 }
  0x8e   :  { %v56_v14 = vmul.f32 %v45_v13, %v257_v0 }
  0x8f   :  { %v49_v15 = vmul.f32 0.5, %v48_v12 }
  0x90   :  { %v62_v16 = vmul.f32 %v216_v10, %v56_v14 }
  0x91   :  { %v50_v17 = vsub.f32 1.5, %v49_v15 }
  0x92   :  { %128 = vmatmul.f32.vlgmr.msra.gmra.mxu0 %v62_v16  ;;  %151 = vmatmul.f32.vlgmr.msra.gmra.mxu1 %v62_v16 }
  0x93   :  { %v51_v18 = vmul.f32 %v222_v7, %v50_v17  ;;  %174 = vmatmul.f32.vlgmr.msra.gmra.mxu2 %v62_v16 }
  0x95   :  { %v55_v19 = vsel %vm54_vm6, %v222_v7, %v51_v18 }
  0x96   :  { %v57_v20 = vmul.f32 %v55_v19, %v291_v11 }
  0x98   :  { %v63_v21 = vmul.f32 %v216_v10, %v57_v20 }
  0x9a   :  { %131 = vmatmul.f32.vlgmr.msra.gmra.mxu3 %v63_v21  ;;  %154 = vmatmul.f32.gmra.mxu1 %v63_v21 }
  0x9b   :  { %177 = vmatmul.f32.gmra.mxu2 %v63_v21 }
 0x10f   :  { %v129_v22 = vpop.f32.mrf.mxu0  ;;  %v152_v23 = vpop.f32.mrf.mxu1 }
 0x110   :  { %181 = vst [vmem:[%s445_s3] sm:$0xff] %v129_v22 }
 0x111   :  { %183 = vst [vmem:[%s446_s4] sm:$0xff] %v152_v23 }
 0x116   :  { %v175_v0 = vpop.f32.mrf.mxu2 }
 0x117   :  { %185 = vst [vmem:[%s447_s5] sm:$0xff] %v175_v0  ;;  %v155_v11 = vpop.f32.mrf.mxu1 }
 0x118   :  { %184 = vst [vmem:[%s446_s4 + $0x8] sm:$0xff] %v155_v11 }
 0x11d   :  { %v132_v24 = vpop.f32.mrf.mxu3 }
 0x11e   :  { %182 = vst [vmem:[%s445_s3 + $0x8] sm:$0xff] %v132_v24  ;;  %v178_v25 = vpop.f32.mrf.mxu2 }
 0x11f   :  { %186 = vst [vmem:[%s447_s5 + $0x8] sm:$0xff] %v178_v25 }

// kernel: _lambda_.5
= control target key start
LH: loop header
LB: loop body
LE: loop exit
PB: predicated region body
PF: predicated region fallthrough
CT: control target
= control target key end

     0   :  { %s1581_s0 = inlined_call_operand.vmem [shape: f32[16,128], index: 0, kind: input, shape index: {}]   ;;  %s1582_s1 = inlined_call_operand.vmem [shape: f32[1,128], index: 1, kind: input, shape index: {}]   ;;  %s1583_s2 = inlined_call_operand.vmem [shape: f32[128,512], index: 2, kind: input, shape index: {}]   ;;  %s1584_s3 = inlined_call_operand.vmem [shape: f32[128,512], index: 3, kind: input, shape index: {}]   ;;  %s1585_s4 = inlined_call_operand.vmem [shape: f32[512,128], index: 4, kind: input, shape index: {}]   ;;  %s1586_s5 = inlined_call_operand.hbm [shape: f32[16,128], index: 5, kind: output, shape index: {}]  }
   0x1   :  { %v842_v0 = vld [vmem:[%s1581_s0] sm:$0xff]  ;;  %v129_v3 = vld [vmem:[%s1583_s2 + $0x1e8] sm:$0xff]  ;;  %v130_v4 = vld [vmem:[%s1583_s2 + $0x1f0] sm:$0xff] }
   0x2   :  { %v128_v1 = vld [vmem:[%s1583_s2 + $0x1e0] sm:$0xff]  ;;  %v23_v2 = vmul.f32 %v842_v0, %v842_v0  ;;  %v131_v5 = vld [vmem:[%s1583_s2 + $0x1f8] sm:$0xff]  ;;  %155 = vmatpush.msra.mxu1 %v129_v3  ;;  %178 = vmatpush.msra.mxu2 %v130_v4  ;;  %v125_v7 = vld [vmem:[%s1583_s2 + $0x1c8] sm:$0xff] }
   0x3   :  { %132 = vmatpush.msra.mxu0 %v128_v1  ;;  %v124_v6 = vld [vmem:[%s1583_s2 + $0x1c0] sm:$0xff]  ;;  %v126_v8 = vld [vmem:[%s1583_s2 + $0x1d0] sm:$0xff]  ;;  %201 = vmatpush.msra.mxu3 %v131_v5  ;;  %v127_v9 = vld [vmem:[%s1583_s2 + $0x1d8] sm:$0xff] }
   0x4   :  { %25 = vadd.xlane.f32.xlu0 %v23_v2  ;;  %v120_v10 = vld [vmem:[%s1583_s2 + $0x1a0] sm:$0xff]  ;;  %v121_v11 = vld [vmem:[%s1583_s2 + $0x1a8] sm:$0xff]  ;;  %156 = vmatpush.msra.mxu1 %v125_v7  ;;  %v122_v13 = vld [vmem:[%s1583_s2 + $0x1b0] sm:$0xff] }
   0x5   :  { %v879_v12 = vld [vmem:[%s1581_s0 + $0x8] sm:$0xff]  ;;  %133 = vmatpush.msra.mxu0 %v124_v6  ;;  %v123_v14 = vld [vmem:[%s1583_s2 + $0x1b8] sm:$0xff]  ;;  %179 = vmatpush.msra.mxu2 %v126_v8  ;;  %v116_v15 = vld [vmem:[%s1583_s2 + $0x180] sm:$0xff] }
   0x6   :  { %202 = vmatpush.msra.mxu3 %v127_v9  ;;  %v117_v16 = vld [vmem:[%s1583_s2 + $0x188] sm:$0xff]  ;;  %157 = vmatpush.msra.mxu1 %v121_v11  ;;  %v118_v17 = vld [vmem:[%s1583_s2 + $0x190] sm:$0xff]  ;;  %v119_v18 = vld [vmem:[%s1583_s2 + $0x198] sm:$0xff]  ;;  %v24_v19 = vmul.f32 %v879_v12, %v879_v12 }
   0x7   :  { %134 = vmatpush.msra.mxu0 %v120_v10  ;;  %180 = vmatpush.msra.mxu2 %v122_v13  ;;  %v112_v20 = vld [vmem:[%s1583_s2 + $0x160] sm:$0xff]  ;;  %v113_v21 = vld [vmem:[%s1583_s2 + $0x168] sm:$0xff]  ;;  %v114_v22 = vld [vmem:[%s1583_s2 + $0x170] sm:$0xff] }
   0x8   :  { %203 = vmatpush.msra.mxu3 %v123_v14  ;;  %158 = vmatpush.msra.mxu1 %v117_v16  ;;  %v115_v23 = vld [vmem:[%s1583_s2 + $0x178] sm:$0xff]  ;;  %v108_v24 = vld [vmem:[%s1583_s2 + $0x140] sm:$0xff]  ;;  %v109_v25 = vld [vmem:[%s1583_s2 + $0x148] sm:$0xff] }
   0x9   :  { %135 = vmatpush.msra.mxu0 %v116_v15  ;;  %181 = vmatpush.msra.mxu2 %v118_v17  ;;  %v110_v26 = vld [vmem:[%s1583_s2 + $0x150] sm:$0xff]  ;;  %v111_v27 = vld [vmem:[%s1583_s2 + $0x158] sm:$0xff]  ;;  %v104_v28 = vld [vmem:[%s1583_s2 + $0x120] sm:$0xff] }
   0xa   :  { %204 = vmatpush.msra.mxu3 %v119_v18  ;;  %159 = vmatpush.msra.mxu1 %v113_v21  ;;  %v105_v29 = vld [vmem:[%s1583_s2 + $0x128] sm:$0xff]  ;;  %v106_v30 = vld [vmem:[%s1583_s2 + $0x130] sm:$0xff]  ;;  %v107_v31 = vld [vmem:[%s1583_s2 + $0x138] sm:$0xff] }
   0xb   :  { %136 = vmatpush.msra.mxu0 %v112_v20  ;;  %182 = vmatpush.msra.mxu2 %v114_v22  ;;  %v100_v32 = vld [vmem:[%s1583_s2 + $0x100] sm:$0xff]  ;;  %v101_v33 = vld [vmem:[%s1583_s2 + $0x108] sm:$0xff]  ;;  %v102_v34 = vld [vmem:[%s1583_s2 + $0x110] sm:$0xff] }
   0xc   :  { %27 = vadd.xlane.f32.xlu0 %v24_v19  ;;  %205 = vmatpush.msra.mxu3 %v115_v23 }
   0xd   :  { %137 = vmatpush.msra.mxu0 %v108_v24  ;;  %160 = vmatpush.msra.mxu1 %v109_v25 }
   0xe   :  { %183 = vmatpush.msra.mxu2 %v110_v26  ;;  %206 = vmatpush.msra.mxu3 %v111_v27 }
   0xf   :  { %138 = vmatpush.msra.mxu0 %v104_v28 }
  0x10   :  { %10 = vsyncpa [#allocation3], 0  ;;  %161 = vmatpush.msra.mxu1 %v105_v29  ;;  %184 = vmatpush.msra.mxu2 %v106_v30  ;;  %v103_v35 = vld [vmem:[%s1583_s2 + $0x118] sm:$0xff]  ;;  %v96_v36 = vld [vmem:[%s1583_s2 + $0xe0] sm:$0xff]  ;;  %v805_v55 = vmov 128.0   ;;  %s806_s14 = smov [#allocation2]  }
  0x11   :  { %207 = vmatpush.msra.mxu3 %v107_v31  ;;  %139 = vmatpush.msra.mxu0 %v100_v32  ;;  %v97_v37 = vld [vmem:[%s1583_s2 + $0xe8] sm:$0xff]  ;;  %v98_v38 = vld [vmem:[%s1583_s2 + $0xf0] sm:$0xff]  ;;  %v99_v39 = vld [vmem:[%s1583_s2 + $0xf8] sm:$0xff]  ;;  %739 = vrcp.f32 %v805_v55  ;;  %s712_s15 = sshll.u32 %s806_s14, 4  ;;  %s714_s18 = sshll.u32 %s1586_s5, 4  ;;  %s713_s15 = int_to_ptr.vmem [resolvable:$true] %s712_s15  ;;  %s715_s18 = int_to_ptr.hbm [resolvable:$true] %s714_s18 }
  0x12   :  { %162 = vmatpush.msra.mxu1 %v101_v33  ;;  %185 = vmatpush.msra.mxu2 %v102_v34  ;;  %v92_v40 = vld [vmem:[%s1583_s2 + $0xc0] sm:$0xff]  ;;  %v93_v41 = vld [vmem:[%s1583_s2 + $0xc8] sm:$0xff]  ;;  %v94_v42 = vld [vmem:[%s1583_s2 + $0xd0] sm:$0xff]  ;;  %s807_s21 = smov 128   ;;  %s808_s22 = smov 8  }
  0x13   :  { %208 = vmatpush.msra.mxu3 %v103_v35  ;;  %140 = vmatpush.msra.mxu0 %v96_v36  ;;  %v95_v43 = vld [vmem:[%s1583_s2 + $0xd8] sm:$0xff]  ;;  %v88_v44 = vld [vmem:[%s1583_s2 + $0xa0] sm:$0xff]  ;;  %v89_v45 = vld [vmem:[%s1583_s2 + $0xa8] sm:$0xff] }
  0x14   :  { %163 = vmatpush.msra.mxu1 %v97_v37  ;;  %186 = vmatpush.msra.mxu2 %v98_v38  ;;  %v90_v46 = vld [vmem:[%s1583_s2 + $0xb0] sm:$0xff]  ;;  %v91_v47 = vld [vmem:[%s1583_s2 + $0xb8] sm:$0xff]  ;;  %v84_v48 = vld [vmem:[%s1583_s2 + $0x80] sm:$0xff] }
  0x15   :  { %209 = vmatpush.msra.mxu3 %v99_v39  ;;  %141 = vmatpush.msra.mxu0 %v92_v40  ;;  %v85_v49 = vld [vmem:[%s1583_s2 + $0x88] sm:$0xff]  ;;  %v86_v50 = vld [vmem:[%s1583_s2 + $0x90] sm:$0xff]  ;;  %v87_v51 = vld [vmem:[%s1583_s2 + $0x98] sm:$0xff] }
  0x16   :  { %164 = vmatpush.msra.mxu1 %v93_v41  ;;  %187 = vmatpush.msra.mxu2 %v94_v42  ;;  %v80_v52 = vld [vmem:[%s1583_s2 + $0x60] sm:$0xff]  ;;  %v81_v53 = vld [vmem:[%s1583_s2 + $0x68] sm:$0xff]  ;;  %v82_v54 = vld [vmem:[%s1583_s2 + $0x70] sm:$0xff] }
  0x17   :  { %210 = vmatpush.msra.mxu3 %v95_v43  ;;  %142 = vmatpush.msra.mxu0 %v88_v44  ;;  %v83_v56 = vld [vmem:[%s1583_s2 + $0x78] sm:$0xff]  ;;  %v76_v57 = vld [vmem:[%s1583_s2 + $0x40] sm:$0xff]  ;;  %v77_v58 = vld [vmem:[%s1583_s2 + $0x48] sm:$0xff]  ;;  %v1042_v5 = vpop.eup %739 }
  0x18   :  { %165 = vmatpush.msra.mxu1 %v89_v45  ;;  %188 = vmatpush.msra.mxu2 %v90_v46  ;;  %v78_v59 = vld [vmem:[%s1583_s2 + $0x50] sm:$0xff]  ;;  %v79_v60 = vld [vmem:[%s1583_s2 + $0x58] sm:$0xff]  ;;  %v72_v61 = vld [vmem:[%s1583_s2 + $0x20] sm:$0xff]  ;;  %v30_v15 = vmul.f32 128.0, %v1042_v5  ;;  %vm34_vm0 = vweird.f32 %v1042_v5 }
  0x19   :  { %211 = vmatpush.msra.mxu3 %v91_v47  ;;  %143 = vmatpush.msra.mxu0 %v84_v48  ;;  %v73_v62 = vld [vmem:[%s1583_s2 + $0x28] sm:$0xff]  ;;  %v74_v63 = vld [vmem:[%s1583_s2 + $0x30] sm:$0xff]  ;;  %v75_v1 = vld [vmem:[%s1583_s2 + $0x38] sm:$0xff] }
  0x1a   :  { %166 = vmatpush.msra.mxu1 %v85_v49  ;;  %189 = vmatpush.msra.mxu2 %v86_v50  ;;  %v68_v2 = vld [vmem:[%s1583_s2] sm:$0xff]  ;;  %v69_v3 = vld [vmem:[%s1583_s2 + $0x8] sm:$0xff]  ;;  %v70_v4 = vld [vmem:[%s1583_s2 + $0x10] sm:$0xff]  ;;  %v31_v24 = vsub.f32 1.0, %v30_v15 }
  0x1b   :  { %212 = vmatpush.msra.mxu3 %v87_v51  ;;  %144 = vmatpush.msra.mxu0 %v80_v52  ;;  %v71_v6 = vld [vmem:[%s1583_s2 + $0x18] sm:$0xff]  ;;  %v284_v7 = vld [vmem:[%s1584_s3 + $0x1e0] sm:$0xff]  ;;  %v285_v8 = vld [vmem:[%s1584_s3 + $0x1e8] sm:$0xff] }
  0x1c   :  { %167 = vmatpush.msra.mxu1 %v81_v53  ;;  %190 = vmatpush.msra.mxu2 %v82_v54  ;;  %v286_v9 = vld [vmem:[%s1584_s3 + $0x1f0] sm:$0xff]  ;;  %v287_v10 = vld [vmem:[%s1584_s3 + $0x1f8] sm:$0xff]  ;;  %v280_v11 = vld [vmem:[%s1584_s3 + $0x1c0] sm:$0xff]  ;;  %v32_v33 = vmul.f32 %v1042_v5, %v31_v24 }
  0x1d   :  { %213 = vmatpush.msra.mxu3 %v83_v56  ;;  %145 = vmatpush.msra.mxu0 %v76_v57  ;;  %v281_v13 = vld [vmem:[%s1584_s3 + $0x1c8] sm:$0xff]  ;;  %v282_v14 = vld [vmem:[%s1584_s3 + $0x1d0] sm:$0xff]  ;;  %v283_v16 = vld [vmem:[%s1584_s3 + $0x1d8] sm:$0xff] }
  0x1e   :  { %168 = vmatpush.msra.mxu1 %v77_v58  ;;  %191 = vmatpush.msra.mxu2 %v78_v59  ;;  %v276_v17 = vld [vmem:[%s1584_s3 + $0x1a0] sm:$0xff]  ;;  %v277_v18 = vld [vmem:[%s1584_s3 + $0x1a8] sm:$0xff]  ;;  %v278_v19 = vld [vmem:[%s1584_s3 + $0x1b0] sm:$0xff]  ;;  %v33_v42 = vadd.f32 %v1042_v5, %v32_v33 }
  0x1f   :  { %214 = vmatpush.msra.mxu3 %v79_v60  ;;  %146 = vmatpush.msra.mxu0 %v72_v61  ;;  %v279_v20 = vld [vmem:[%s1584_s3 + $0x1b8] sm:$0xff]  ;;  %v272_v21 = vld [vmem:[%s1584_s3 + $0x180] sm:$0xff]  ;;  %v273_v22 = vld [vmem:[%s1584_s3 + $0x188] sm:$0xff] }
  0x20   :  { %169 = vmatpush.msra.mxu1 %v73_v62  ;;  %192 = vmatpush.msra.mxu2 %v74_v63  ;;  %v274_v23 = vld [vmem:[%s1584_s3 + $0x190] sm:$0xff]  ;;  %v275_v25 = vld [vmem:[%s1584_s3 + $0x198] sm:$0xff]  ;;  %v268_v26 = vld [vmem:[%s1584_s3 + $0x160] sm:$0xff]  ;;  %v35_v48 = vsel %vm34_vm0, %v1042_v5, %v33_v42 }
  0x21   :  { %215 = vmatpush.msra.mxu3 %v75_v1  ;;  %147 = vmatpush.msra.mxu0 %v68_v2  ;;  %v269_v27 = vld [vmem:[%s1584_s3 + $0x168] sm:$0xff]  ;;  %v270_v28 = vld [vmem:[%s1584_s3 + $0x170] sm:$0xff]  ;;  %v271_v29 = vld [vmem:[%s1584_s3 + $0x178] sm:$0xff] }
  0x22   :  { %170 = vmatpush.msra.mxu1 %v69_v3  ;;  %193 = vmatpush.msra.mxu2 %v70_v4  ;;  %v264_v30 = vld [vmem:[%s1584_s3 + $0x140] sm:$0xff]  ;;  %v265_v31 = vld [vmem:[%s1584_s3 + $0x148] sm:$0xff]  ;;  %v266_v32 = vld [vmem:[%s1584_s3 + $0x150] sm:$0xff] }
  0x23   :  { %216 = vmatpush.msra.mxu3 %v71_v6  ;;  %288 = vmatpush.msrb.mxu0 %v284_v7  ;;  %v267_v34 = vld [vmem:[%s1584_s3 + $0x158] sm:$0xff]  ;;  %v260_v35 = vld [vmem:[%s1584_s3 + $0x120] sm:$0xff]  ;;  %v261_v36 = vld [vmem:[%s1584_s3 + $0x128] sm:$0xff] }
  0x24   :  { %311 = vmatpush.msrb.mxu1 %v285_v8  ;;  %334 = vmatpush.msrb.mxu2 %v286_v9  ;;  %v262_v37 = vld [vmem:[%s1584_s3 + $0x130] sm:$0xff]  ;;  %v263_v38 = vld [vmem:[%s1584_s3 + $0x138] sm:$0xff]  ;;  %v256_v39 = vld [vmem:[%s1584_s3 + $0x100] sm:$0xff] }
  0x25   :  { %357 = vmatpush.msrb.mxu3 %v287_v10  ;;  %289 = vmatpush.msrb.mxu0 %v280_v11  ;;  %v257_v40 = vld [vmem:[%s1584_s3 + $0x108] sm:$0xff]  ;;  %v258_v41 = vld [vmem:[%s1584_s3 + $0x110] sm:$0xff]  ;;  %v259_v43 = vld [vmem:[%s1584_s3 + $0x118] sm:$0xff] }
  0x26   :  { %312 = vmatpush.msrb.mxu1 %v281_v13  ;;  %335 = vmatpush.msrb.mxu2 %v282_v14  ;;  %v252_v44 = vld [vmem:[%s1584_s3 + $0xe0] sm:$0xff]  ;;  %v253_v45 = vld [vmem:[%s1584_s3 + $0xe8] sm:$0xff]  ;;  %v254_v46 = vld [vmem:[%s1584_s3 + $0xf0] sm:$0xff] }
  0x27   :  { %358 = vmatpush.msrb.mxu3 %v283_v16  ;;  %290 = vmatpush.msrb.mxu0 %v276_v17  ;;  %v255_v47 = vld [vmem:[%s1584_s3 + $0xf8] sm:$0xff]  ;;  %v248_v49 = vld [vmem:[%s1584_s3 + $0xc0] sm:$0xff]  ;;  %v249_v50 = vld [vmem:[%s1584_s3 + $0xc8] sm:$0xff] }
  0x28   :  { %313 = vmatpush.msrb.mxu1 %v277_v18  ;;  %336 = vmatpush.msrb.mxu2 %v278_v19  ;;  %v250_v51 = vld [vmem:[%s1584_s3 + $0xd0] sm:$0xff]  ;;  %v251_v52 = vld [vmem:[%s1584_s3 + $0xd8] sm:$0xff]  ;;  %v244_v54 = vld [vmem:[%s1584_s3 + $0xa0] sm:$0xff] }
  0x29   :  { %359 = vmatpush.msrb.mxu3 %v279_v20  ;;  %291 = vmatpush.msrb.mxu0 %v272_v21  ;;  %v245_v55 = vld [vmem:[%s1584_s3 + $0xa8] sm:$0xff]  ;;  %v246_v56 = vld [vmem:[%s1584_s3 + $0xb0] sm:$0xff]  ;;  %v247_v58 = vld [vmem:[%s1584_s3 + $0xb8] sm:$0xff] }
  0x2a   :  { %314 = vmatpush.msrb.mxu1 %v273_v22  ;;  %337 = vmatpush.msrb.mxu2 %v274_v23  ;;  %v240_v59 = vld [vmem:[%s1584_s3 + $0x80] sm:$0xff]  ;;  %v241_v60 = vld [vmem:[%s1584_s3 + $0x88] sm:$0xff]  ;;  %v242_v61 = vld [vmem:[%s1584_s3 + $0x90] sm:$0xff] }
  0x2b   :  { %360 = vmatpush.msrb.mxu3 %v275_v25  ;;  %292 = vmatpush.msrb.mxu0 %v268_v26  ;;  %v243_v62 = vld [vmem:[%s1584_s3 + $0x98] sm:$0xff]  ;;  %v236_v1 = vld [vmem:[%s1584_s3 + $0x60] sm:$0xff]  ;;  %v237_v2 = vld [vmem:[%s1584_s3 + $0x68] sm:$0xff] }
  0x2c   :  { %315 = vmatpush.msrb.mxu1 %v269_v27  ;;  %338 = vmatpush.msrb.mxu2 %v270_v28  ;;  %v238_v3 = vld [vmem:[%s1584_s3 + $0x70] sm:$0xff]  ;;  %v239_v4 = vld [vmem:[%s1584_s3 + $0x78] sm:$0xff]  ;;  %v232_v5 = vld [vmem:[%s1584_s3 + $0x40] sm:$0xff] }
  0x2d   :  { %361 = vmatpush.msrb.mxu3 %v271_v29  ;;  %293 = vmatpush.msrb.mxu0 %v264_v30  ;;  %v233_v6 = vld [vmem:[%s1584_s3 + $0x48] sm:$0xff]  ;;  %v234_v7 = vld [vmem:[%s1584_s3 + $0x50] sm:$0xff]  ;;  %v235_v8 = vld [vmem:[%s1584_s3 + $0x58] sm:$0xff] }
  0x2e   :  { %316 = vmatpush.msrb.mxu1 %v265_v31  ;;  %339 = vmatpush.msrb.mxu2 %v266_v32  ;;  %v228_v9 = vld [vmem:[%s1584_s3 + $0x20] sm:$0xff]  ;;  %v229_v10 = vld [vmem:[%s1584_s3 + $0x28] sm:$0xff]  ;;  %v230_v11 = vld [vmem:[%s1584_s3 + $0x30] sm:$0xff] }
  0x2f   :  { %362 = vmatpush.msrb.mxu3 %v267_v34  ;;  %294 = vmatpush.msrb.mxu0 %v260_v35  ;;  %v231_v13 = vld [vmem:[%s1584_s3 + $0x38] sm:$0xff]  ;;  %v224_v15 = vld [vmem:[%s1584_s3] sm:$0xff]  ;;  %v225_v16 = vld [vmem:[%s1584_s3 + $0x8] sm:$0xff] }
  0x30   :  { %317 = vmatpush.msrb.mxu1 %v261_v36  ;;  %340 = vmatpush.msrb.mxu2 %v262_v37  ;;  %v226_v18 = vld [vmem:[%s1584_s3 + $0x10] sm:$0xff]  ;;  %v227_v19 = vld [vmem:[%s1584_s3 + $0x18] sm:$0xff]  ;;  %v738_v29 = vld [vmem:[%s1582_s1] ss:$0 sm:$0xff] }
  0x31   :  { %363 = vmatpush.msrb.mxu3 %v263_v38  ;;  %295 = vmatpush.msrb.mxu0 %v256_v39  ;;  %v561_v42 = vld [vmem:[%s1585_s4 + $0x68] sm:$0xff] }
  0x32   :  { %318 = vmatpush.msrb.mxu1 %v257_v40  ;;  %341 = vmatpush.msrb.mxu2 %v258_v41  ;;  %v562_v40 = vld [vmem:[%s1585_s4 + $0x70] sm:$0xff] }
  0x33   :  { %364 = vmatpush.msrb.mxu3 %v259_v43  ;;  %296 = vmatpush.msrb.mxu0 %v252_v44  ;;  %v578_v41 = vld [vmem:[%s1585_s4 + $0xf0] sm:$0xff]  ;;  %v577_v43 = vld [vmem:[%s1585_s4 + $0xe8] sm:$0xff]  ;;  %v560_v44 = vld [vmem:[%s1585_s4 + $0x60] sm:$0xff] }
  0x34   :  { %319 = vmatpush.msrb.mxu1 %v253_v45  ;;  %342 = vmatpush.msrb.mxu2 %v254_v46  ;;  %v576_v45 = vld [vmem:[%s1585_s4 + $0xe0] sm:$0xff]  ;;  %v595_v46 = vld [vmem:[%s1585_s4 + $0x178] sm:$0xff] }
  0x35   :  { %365 = vmatpush.msrb.mxu3 %v255_v47  ;;  %297 = vmatpush.msrb.mxu0 %v248_v49  ;;  %v611_v47 = vld [vmem:[%s1585_s4 + $0x1f8] sm:$0xff] }
  0x36   :  { %320 = vmatpush.msrb.mxu1 %v249_v50  ;;  %343 = vmatpush.msrb.mxu2 %v250_v51  ;;  %v575_v49 = vld [vmem:[%s1585_s4 + $0xd8] sm:$0xff]  ;;  %v594_v50 = vld [vmem:[%s1585_s4 + $0x170] sm:$0xff] }
  0x37   :  { %366 = vmatpush.msrb.mxu3 %v251_v52  ;;  %298 = vmatpush.msrb.mxu0 %v244_v54  ;;  %v610_v51 = vld [vmem:[%s1585_s4 + $0x1f0] sm:$0xff]  ;;  %v593_v54 = vld [vmem:[%s1585_s4 + $0x168] sm:$0xff] }
  0x38   :  { %321 = vmatpush.msrb.mxu1 %v245_v55  ;;  %344 = vmatpush.msrb.mxu2 %v246_v56  ;;  %v558_v52 = vld [vmem:[%s1585_s4 + $0x50] sm:$0xff]  ;;  %v609_v55 = vld [vmem:[%s1585_s4 + $0x1e8] sm:$0xff] }
  0x39   :  { %367 = vmatpush.msrb.mxu3 %v247_v58  ;;  %299 = vmatpush.msrb.mxu0 %v240_v59  ;;  %v557_v56 = vld [vmem:[%s1585_s4 + $0x48] sm:$0xff]  ;;  %v592_v58 = vld [vmem:[%s1585_s4 + $0x160] sm:$0xff] }
  0x3a   :  { %322 = vmatpush.msrb.mxu1 %v241_v60  ;;  %345 = vmatpush.msrb.mxu2 %v242_v61  ;;  %v608_v59 = vld [vmem:[%s1585_s4 + $0x1e0] sm:$0xff] }
  0x3b   :  { %368 = vmatpush.msrb.mxu3 %v243_v62  ;;  %300 = vmatpush.msrb.mxu0 %v236_v1  ;;  %v556_v60 = vld [vmem:[%s1585_s4 + $0x40] sm:$0xff]  ;;  %v591_v62 = vld [vmem:[%s1585_s4 + $0x158] sm:$0xff] }
  0x3c   :  { %323 = vmatpush.msrb.mxu1 %v237_v2  ;;  %346 = vmatpush.msrb.mxu2 %v238_v3  ;;  %v572_v61 = vld [vmem:[%s1585_s4 + $0xc0] sm:$0xff]  ;;  %v555_v1 = vld [vmem:[%s1585_s4 + $0x38] sm:$0xff]  ;;  %v590_v3 = vld [vmem:[%s1585_s4 + $0x150] sm:$0xff] }
  0x3d   :  { %369 = vmatpush.msrb.mxu3 %v239_v4  ;;  %301 = vmatpush.msrb.mxu0 %v232_v5  ;;  %v571_v2 = vld [vmem:[%s1585_s4 + $0xb8] sm:$0xff]  ;;  %v606_v4 = vld [vmem:[%s1585_s4 + $0x1d0] sm:$0xff] }
  0x3e   :  { %324 = vmatpush.msrb.mxu1 %v233_v6  ;;  %347 = vmatpush.msrb.mxu2 %v234_v7  ;;  %v554_v7 = vld [vmem:[%s1585_s4 + $0x30] sm:$0xff] }
  0x3f   :  { %370 = vmatpush.msrb.mxu3 %v235_v8  ;;  %302 = vmatpush.msrb.mxu0 %v228_v9  ;;  %v570_v8 = vld [vmem:[%s1585_s4 + $0xb0] sm:$0xff]  ;;  %v589_v9 = vld [vmem:[%s1585_s4 + $0x148] sm:$0xff] }
  0x40   :  { %325 = vmatpush.msrb.mxu1 %v229_v10  ;;  %348 = vmatpush.msrb.mxu2 %v230_v11 }
  0x41   :  { %371 = vmatpush.msrb.mxu3 %v231_v13  ;;  %303 = vmatpush.msrb.mxu0 %v224_v15  ;;  %v605_v13 = vld [vmem:[%s1585_s4 + $0x1c8] sm:$0xff] }
  0x42   :  { %326 = vmatpush.msrb.mxu1 %v225_v16  ;;  %349 = vmatpush.msrb.mxu2 %v226_v18  ;;  %v569_v15 = vld [vmem:[%s1585_s4 + $0xa8] sm:$0xff]  ;;  %v588_v16 = vld [vmem:[%s1585_s4 + $0x140] sm:$0xff] }
  0x43   :  { %372 = vmatpush.msrb.mxu3 %v227_v19  ;;  %v552_v18 = vld [vmem:[%s1585_s4 + $0x20] sm:$0xff] }
  0x44   :  { %v568_v19 = vld [vmem:[%s1585_s4 + $0xa0] sm:$0xff] }
  0x77   :  { %v26_v53 = vpop.xlane.xlu0 %25 }
  0x78   :  { %v36_v57 = vmul.f32 %v35_v48, %v26_v53  ;;  %v574_v53 = vld [vmem:[%s1585_s4 + $0xd0] sm:$0xff] }
  0x7a   :  { %v38_v63 = vadd.f32 1e-06, %v36_v57  ;;  %v573_v57 = vld [vmem:[%s1585_s4 + $0xc8] sm:$0xff] }
  0x7c   :  { %741 = vrsqrt.f32 %v38_v63  ;;  %vm46_vm2 = vweird.f32 %v38_v63 }
  0x7f   :  { %v28_v14 = vpop.xlane.xlu0 %27 }
  0x80   :  { %v37_v17 = vmul.f32 %v35_v48, %v28_v14  ;;  %v559_v48 = vld [vmem:[%s1585_s4 + $0x58] sm:$0xff]  ;;  %v553_v14 = vld [vmem:[%s1585_s4 + $0x28] sm:$0xff] }
  0x82   :  { %v742_v20 = vpop.eup %741  ;;  %v39_v21 = vadd.f32 1e-06, %v37_v17  ;;  %v604_v17 = vld [vmem:[%s1585_s4 + $0x1c0] sm:$0xff] }
  0x83   :  { %v41_v22 = vmul.f32 %v742_v20, %v38_v63  ;;  %vm47_vm1 = vweird.f32 %v742_v20  ;;  %v607_v63 = vld [vmem:[%s1585_s4 + $0x1d8] sm:$0xff] }
  0x84   :  { %743 = vrsqrt.f32 %v39_v21  ;;  %vm48_vm3 = vmor %vm46_vm2, %vm47_vm1  ;;  %vm56_vm5 = vweird.f32 %v39_v21 }
  0x85   :  { %v42_v23 = vmul.f32 %v742_v20, %v41_v22  ;;  %v551_v22 = vld [vmem:[%s1585_s4 + $0x18] sm:$0xff] }
  0x87   :  { %v43_v24 = vmul.f32 0.5, %v42_v23  ;;  %v567_v23 = vld [vmem:[%s1585_s4 + $0x98] sm:$0xff] }
  0x89   :  { %v44_v25 = vsub.f32 1.5, %v43_v24  ;;  %v586_v24 = vld [vmem:[%s1585_s4 + $0x130] sm:$0xff] }
  0x8a   :  { %v744_v26 = vpop.eup %743 }
  0x8b   :  { %v45_v27 = vmul.f32 %v742_v20, %v44_v25  ;;  %v51_v28 = vmul.f32 %v744_v26, %v39_v21  ;;  %vm57_vm4 = vweird.f32 %v744_v26  ;;  %v603_v21 = vld [vmem:[%s1585_s4 + $0x1b8] sm:$0xff] }
  0x8c   :  { %vm58_vm6 = vmor %vm56_vm5, %vm57_vm4 }
  0x8d   :  { %v49_v30 = vsel %vm48_vm3, %v742_v20, %v45_v27  ;;  %v52_v31 = vmul.f32 %v744_v26, %v51_v28  ;;  %v587_v20 = vld [vmem:[%s1585_s4 + $0x138] sm:$0xff]  ;;  %v602_v27 = vld [vmem:[%s1585_s4 + $0x1b0] sm:$0xff] }
  0x8e   :  { %v60_v32 = vmul.f32 %v49_v30, %v842_v0  ;;  %v563_v0 = vld [vmem:[%s1585_s4 + $0x78] sm:$0xff] }
  0x8f   :  { %v53_v33 = vmul.f32 0.5, %v52_v31 }
  0x90   :  { %v66_v34 = vmul.f32 %v738_v29, %v60_v32  ;;  %v550_v32 = vld [vmem:[%s1585_s4 + $0x10] sm:$0xff] }
  0x91   :  { %v54_v35 = vsub.f32 1.5, %v53_v33  ;;  %v566_v33 = vld [vmem:[%s1585_s4 + $0x90] sm:$0xff] }
  0x92   :  { %148 = vmatmul.f32.vlgmr.msra.gmra.mxu0 %v66_v34  ;;  %171 = vmatmul.f32.vlgmr.msra.gmra.mxu1 %v66_v34 }
  0x93   :  { %v55_v36 = vmul.f32 %v744_v26, %v54_v35  ;;  %194 = vmatmul.f32.vlgmr.msra.gmra.mxu2 %v66_v34  ;;  %217 = vmatmul.f32.vlgmr.msra.gmra.mxu3 %v66_v34  ;;  %v585_v35 = vld [vmem:[%s1585_s4 + $0x128] sm:$0xff] }
  0x94   :  { %612 = vmatpush.msra.mxu0 %v563_v0  ;;  %658 = vmatpush.msra.mxu2 %v595_v46  ;;  %v549_v0 = vld [vmem:[%s1585_s4 + $0x8] sm:$0xff]  ;;  %v583_v46 = vld [vmem:[%s1585_s4 + $0x118] sm:$0xff] }
  0x95   :  { %v59_v37 = vsel %vm58_vm6, %v744_v26, %v55_v36  ;;  %681 = vmatpush.msra.mxu3 %v611_v47  ;;  %v601_v36 = vld [vmem:[%s1585_s4 + $0x1a8] sm:$0xff]  ;;  %v599_v47 = vld [vmem:[%s1585_s4 + $0x198] sm:$0xff] }
  0x96   :  { %v61_v38 = vmul.f32 %v59_v37, %v879_v12  ;;  %v579_v12 = vld [vmem:[%s1585_s4 + $0xf8] sm:$0xff]  ;;  %613 = vmatpush.msra.mxu0 %v562_v40  ;;  %659 = vmatpush.msra.mxu2 %v594_v50  ;;  %v584_v40 = vld [vmem:[%s1585_s4 + $0x120] sm:$0xff] }
  0x97   :  { %635 = vmatpush.msra.mxu1 %v579_v12  ;;  %682 = vmatpush.msra.mxu3 %v610_v51  ;;  %v565_v12 = vld [vmem:[%s1585_s4 + $0x88] sm:$0xff] }
  0x98   :  { %v67_v39 = vmul.f32 %v738_v29, %v61_v38  ;;  %614 = vmatpush.msra.mxu0 %v561_v42  ;;  %660 = vmatpush.msra.mxu2 %v593_v54 }
  0x99   :  { %636 = vmatpush.msra.mxu1 %v578_v41  ;;  %683 = vmatpush.msra.mxu3 %v609_v55 }
  0x9a   :  { %151 = vmatmul.f32.gmra.mxu0 %v67_v39  ;;  %174 = vmatmul.f32.gmra.mxu1 %v67_v39 }
  0x9b   :  { %197 = vmatmul.f32.gmra.mxu2 %v67_v39  ;;  %220 = vmatmul.f32.gmra.mxu3 %v67_v39 }
  0x9c   :  { %637 = vmatpush.msra.mxu1 %v577_v43  ;;  %615 = vmatpush.msra.mxu0 %v560_v44  ;;  %v600_v43 = vld [vmem:[%s1585_s4 + $0x1a0] sm:$0xff] }
  0x9d   :  { %661 = vmatpush.msra.mxu2 %v592_v58  ;;  %684 = vmatpush.msra.mxu3 %v608_v59  ;;  %v548_v44 = vld [vmem:[%s1585_s4] sm:$0xff] }
  0x9e   :  { %638 = vmatpush.msra.mxu1 %v576_v45  ;;  %616 = vmatpush.msra.mxu0 %v559_v48  ;;  %v564_v45 = vld [vmem:[%s1585_s4 + $0x80] sm:$0xff]  ;;  %v582_v48 = vld [vmem:[%s1585_s4 + $0x110] sm:$0xff] }
  0x9f   :  { %662 = vmatpush.msra.mxu2 %v591_v62  ;;  %685 = vmatpush.msra.mxu3 %v607_v63  ;;  %v580_v62 = vld [vmem:[%s1585_s4 + $0x100] sm:$0xff] }
  0xa0   :  { %639 = vmatpush.msra.mxu1 %v575_v49  ;;  %617 = vmatpush.msra.mxu0 %v558_v52  ;;  %v598_v49 = vld [vmem:[%s1585_s4 + $0x190] sm:$0xff]  ;;  %v581_v52 = vld [vmem:[%s1585_s4 + $0x108] sm:$0xff]  ;;  %v596_v63 = vld [vmem:[%s1585_s4 + $0x180] sm:$0xff] }
  0xa1   :  { %663 = vmatpush.msra.mxu2 %v590_v3  ;;  %686 = vmatpush.msra.mxu3 %v606_v4 }
  0xa2   :  { %304 = vmatmul.f32.vlgmr.msrb.gmra.mxu0 %v66_v34  ;;  %327 = vmatmul.f32.vlgmr.msrb.gmra.mxu1 %v66_v34 }
  0xa3   :  { %350 = vmatmul.f32.vlgmr.msrb.gmra.mxu2 %v66_v34  ;;  %373 = vmatmul.f32.vlgmr.msrb.gmra.mxu3 %v66_v34 }
  0xa4   :  { %640 = vmatpush.msra.mxu1 %v574_v53  ;;  %618 = vmatpush.msra.mxu0 %v557_v56  ;;  %v597_v53 = vld [vmem:[%s1585_s4 + $0x188] sm:$0xff] }
  0xa5   :  { %664 = vmatpush.msra.mxu2 %v589_v9  ;;  %687 = vmatpush.msra.mxu3 %v605_v13 }
  0xa6   :  { %641 = vmatpush.msra.mxu1 %v573_v57  ;;  %619 = vmatpush.msra.mxu0 %v556_v60 }
  0xa7   :  { %665 = vmatpush.msra.mxu2 %v588_v16  ;;  %688 = vmatpush.msra.mxu3 %v604_v17 }
  0xa8   :  { %642 = vmatpush.msra.mxu1 %v572_v61  ;;  %620 = vmatpush.msra.mxu0 %v555_v1 }
  0xa9   :  { %666 = vmatpush.msra.mxu2 %v587_v20  ;;  %689 = vmatpush.msra.mxu3 %v603_v21 }
  0xaa   :  { %307 = vmatmul.f32.gmra.mxu0 %v67_v39  ;;  %330 = vmatmul.f32.gmra.mxu1 %v67_v39 }
  0xab   :  { %353 = vmatmul.f32.gmra.mxu2 %v67_v39  ;;  %376 = vmatmul.f32.gmra.mxu3 %v67_v39 }
  0xac   :  { %643 = vmatpush.msra.mxu1 %v571_v2  ;;  %621 = vmatpush.msra.mxu0 %v554_v7 }
  0xad   :  { %667 = vmatpush.msra.mxu2 %v586_v24  ;;  %690 = vmatpush.msra.mxu3 %v602_v27 }
  0xae   :  { %644 = vmatpush.msra.mxu1 %v570_v8  ;;  %622 = vmatpush.msra.mxu0 %v553_v14 }
  0xaf   :  { %668 = vmatpush.msra.mxu2 %v585_v35  ;;  %691 = vmatpush.msra.mxu3 %v601_v36 }
  0xb0   :  { %645 = vmatpush.msra.mxu1 %v569_v15  ;;  %623 = vmatpush.msra.mxu0 %v552_v18 }
  0xb1   :  { %669 = vmatpush.msra.mxu2 %v584_v40  ;;  %692 = vmatpush.msra.mxu3 %v600_v43 }
  0xb2   :  { %646 = vmatpush.msra.mxu1 %v568_v19  ;;  %624 = vmatpush.msra.mxu0 %v551_v22 }
  0xb3   :  { %670 = vmatpush.msra.mxu2 %v583_v46  ;;  %693 = vmatpush.msra.mxu3 %v599_v47 }
  0xb4   :  { %647 = vmatpush.msra.mxu1 %v567_v23  ;;  %625 = vmatpush.msra.mxu0 %v550_v32 }
  0xb5   :  { %671 = vmatpush.msra.mxu2 %v582_v48  ;;  %694 = vmatpush.msra.mxu3 %v598_v49 }
  0xb6   :  { %648 = vmatpush.msra.mxu1 %v566_v33  ;;  %626 = vmatpush.msra.mxu0 %v549_v0 }
  0xb7   :  { %672 = vmatpush.msra.mxu2 %v581_v52  ;;  %695 = vmatpush.msra.mxu3 %v597_v53 }
  0xb8   :  { %649 = vmatpush.msra.mxu1 %v565_v12  ;;  %627 = vmatpush.msra.mxu0 %v548_v44 }
  0xb9   :  { %673 = vmatpush.msra.mxu2 %v580_v62  ;;  %696 = vmatpush.msra.mxu3 %v596_v63 }
  0xba   :  { %650 = vmatpush.msra.mxu1 %v564_v45 }
 0x10f   :  { %v1339_v5 = vpop.f32.mrf.mxu0  ;;  %v1341_v6 = vpop.f32.mrf.mxu1 }
 0x110   :  { %v726_v10 = vmul.f32 -1.442695, %v1339_v5  ;;  %v727_v11 = vmul.f32 -1.442695, %v1341_v6 }
 0x112   :  { %745 = vpow2.f32 %v726_v10 }
 0x113   :  { %747 = vpow2.f32 %v727_v11 }
 0x116   :  { %v1390_v25 = vpop.f32.mrf.mxu2  ;;  %v1392_v26 = vpop.f32.mrf.mxu3 }
 0x117   :  { %v728_v28 = vmul.f32 -1.442695, %v1390_v25  ;;  %v729_v29 = vmul.f32 -1.442695, %v1392_v26  ;;  %v1399_v30 = vpop.f32.mrf.mxu0  ;;  %v1401_v31 = vpop.f32.mrf.mxu1 }
 0x118   :  { %v746_v34 = vpop.eup %745  ;;  %v730_v39 = vmul.f32 -1.442695, %v1399_v30  ;;  %v731_v42 = vmul.f32 -1.442695, %v1401_v31 }
 0x119   :  { %v748_v37 = vpop.eup %747  ;;  %v1415_v38 = vadd.f32 1.0, %v746_v34  ;;  %749 = vpow2.f32 %v728_v28 }
 0x11a   :  { %v1427_v41 = vadd.f32 1.0, %v748_v37  ;;  %751 = vpow2.f32 %v729_v29 }
 0x11b   :  { %753 = vrcp.f32 %v1415_v38  ;;  %v421_v55 = vand.u32 2147483647, %v1415_v38  ;;  %v423_v59 = vand.u32 2147483648, %v1415_v38  ;;  %vm417_vm7 = vweird.f32 %v1415_v38 }
 0x11c   :  { %755 = vrcp.f32 %v1427_v41  ;;  %v436_v7 = vand.u32 2147483647, %v1427_v41  ;;  %vm432_vm8 = vweird.f32 %v1427_v41  ;;  %v438_v11 = vand.u32 2147483648, %v1427_v41 }
 0x11d   :  { %757 = vpow2.f32 %v730_v39  ;;  %vm1485_vm9 = vcmp.eq.f32.partialorder %v421_v55, 8.507059e+37  ;;  %v424_v14 = vor.u32 1.1754944e-38, %v423_v59 }
 0x11e   :  { %759 = vpow2.f32 %v731_v42  ;;  %v1453_v50 = vpop.f32.mrf.mxu2  ;;  %v1464_v57 = vpop.f32.mrf.mxu3  ;;  %vm1493_vm12 = vcmp.eq.f32.partialorder %v436_v7, 8.507059e+37  ;;  %v439_v28 = vor.u32 1.1754944e-38, %v438_v11 }
 0x11f   :  { %v750_v51 = vpop.eup %749  ;;  %v732_v61 = vmul.f32 -1.442695, %v1453_v50  ;;  %v733_v8 = vmul.f32 -1.442695, %v1464_v57  ;;  %v305_v47 = vpop.f32.mrf.mxu0 }
 0x120   :  { %v752_v54 = vpop.eup %751  ;;  %v1462_v56 = vadd.f32 1.0, %v750_v51  ;;  %v328_v7 = vpop.f32.mrf.mxu1 }
 0x121   :  { %v754_v58 = vpop.eup %753  ;;  %v1467_v60 = vadd.f32 1.0, %v752_v54 }
 0x122   :  { %v756_v1 = vpop.eup %755  ;;  %v413_v2 = vmul.f32 %v754_v58, %v1415_v38  ;;  %761 = vrcp.f32 %v1462_v56  ;;  %vm418_vm10 = vweird.f32 %v754_v58  ;;  %v451_v23 = vand.u32 2147483647, %v1462_v56 }
 0x123   :  { %v758_v3 = vpop.eup %757  ;;  %v428_v4 = vmul.f32 %v756_v1, %v1427_v41  ;;  %763 = vrcp.f32 %v1467_v60  ;;  %vm433_vm11 = vweird.f32 %v756_v1  ;;  %v453_v24 = vand.u32 2147483648, %v1462_v56  ;;  %vm419_vm13 = vmor %vm417_vm7, %vm418_vm10 }
 0x124   :  { %v760_v9 = vpop.eup %759  ;;  %v414_v10 = vsub.f32 1.0, %v413_v2  ;;  %765 = vpow2.f32 %v732_v61  ;;  %v1489_v17 = vadd.f32 1.0, %v758_v3  ;;  %v466_v32 = vand.u32 2147483647, %v1467_v60  ;;  %vm1507_vm14 = vmor %vm432_vm8, %vm433_vm11 }
 0x125   :  { %v429_v15 = vsub.f32 1.0, %v428_v4  ;;  %v1491_v18 = vadd.f32 1.0, %v760_v9  ;;  %767 = vpow2.f32 %v733_v8  ;;  %vm447_vm15 = vweird.f32 %v1462_v56 }
 0x126   :  { %v415_v16 = vmul.f32 %v754_v58, %v414_v10  ;;  %769 = vrcp.f32 %v1489_v17  ;;  %v468_v36 = vand.u32 2147483648, %v1467_v60  ;;  %vm1520_vm0 = vcmp.eq.f32.partialorder %v451_v23, 8.507059e+37 }
 0x127   :  { %v430_v19 = vmul.f32 %v756_v1, %v429_v15  ;;  %771 = vrcp.f32 %v1491_v18  ;;  %v454_v42 = vor.u32 1.1754944e-38, %v453_v24  ;;  %vm462_vm1 = vweird.f32 %v1467_v60 }
 0x128   :  { %v762_v21 = vpop.eup %761  ;;  %v416_v22 = vadd.f32 %v754_v58, %v415_v16  ;;  %vm1525_vm3 = vcmp.eq.f32.partialorder %v466_v32, 8.507059e+37  ;;  %v469_v49 = vor.u32 1.1754944e-38, %v468_v36  ;;  %vm477_vm6 = vweird.f32 %v1489_v17  ;;  %v331_v41 = vpop.f32.mrf.mxu1 }
 0x129   :  { %v431_v27 = vadd.f32 %v756_v1, %v430_v19  ;;  %v443_v29 = vmul.f32 %v762_v21, %v1462_v56  ;;  %v764_v33 = vpop.eup %763  ;;  %vm448_vm2 = vweird.f32 %v762_v21  ;;  %v481_v59 = vand.u32 2147483647, %v1489_v17  ;;  %v351_v19 = vpop.f32.mrf.mxu2 }
 0x12a   :  { %v420_v34 = vsel %vm419_vm13, %v754_v58, %v416_v22  ;;  %v766_v37 = vpop.eup %765  ;;  %v458_v12 = vmul.f32 %v764_v33, %v1467_v60  ;;  %vm463_vm4 = vweird.f32 %v764_v33  ;;  %vm449_vm5 = vmor %vm447_vm15, %vm448_vm2  ;;  %v483_v4 = vand.u32 2147483648, %v1489_v17 }
 0x12b   :  { %v425_v38 = vsel %vm1485_vm9, %v424_v14, %v420_v34  ;;  %v435_v39 = vsel %vm1507_vm14, %v756_v1, %v431_v27  ;;  %v444_v0 = vsub.f32 1.0, %v443_v29  ;;  %v768_v43 = vpop.eup %767  ;;  %v1531_v51 = vadd.f32 1.0, %v766_v37  ;;  %vm464_vm7 = vmor %vm462_vm1, %vm463_vm4 }
 0x12c   :  { %v532_v40 = vmul.f32 %v425_v38, %v1339_v5  ;;  %v459_v45 = vsub.f32 1.0, %v458_v12  ;;  %v770_v48 = vpop.eup %769  ;;  %v440_v5 = vsel %vm1493_vm12, %v439_v28, %v435_v39  ;;  %v1539_v61 = vadd.f32 1.0, %v768_v43  ;;  %v308_v12 = vpop.f32.mrf.mxu0 }
 0x12d   :  { %v445_v44 = vmul.f32 %v762_v21, %v444_v0  ;;  %v473_v55 = vmul.f32 %v770_v48, %v1489_v17  ;;  %v772_v58 = vpop.eup %771  ;;  %773 = vrcp.f32 %v1531_v51  ;;  %v533_v3 = vmul.f32 %v440_v5, %v1341_v6 }
 0x12e   :  { %v540_v52 = vmul.f32 %v532_v40, %v305_v47  ;;  %v460_v54 = vmul.f32 %v764_v33, %v459_v45  ;;  %v488_v2 = vmul.f32 %v772_v58, %v1491_v18  ;;  %vm478_vm8 = vweird.f32 %v770_v48 }
 0x12f   :  { %v446_v53 = vadd.f32 %v762_v21, %v445_v44  ;;  %v474_v1 = vsub.f32 1.0, %v473_v55  ;;  %v496_v6 = vand.u32 2147483647, %v1491_v18  ;;  %v498_v14 = vand.u32 2147483648, %v1491_v18  ;;  %vm479_vm10 = vmor %vm477_vm6, %vm478_vm8 }
 0x130   :  { %628 = vmatmul.f32.vlgmr.msra.gmra.mxu0 %v540_v52  ;;  %v461_v63 = vadd.f32 %v764_v33, %v460_v54  ;;  %v489_v11 = vsub.f32 1.0, %v488_v2  ;;  %775 = vrcp.f32 %v1539_v61  ;;  %vm493_vm9 = vweird.f32 %v772_v58 }
 0x131   :  { %v450_v62 = vsel %vm449_vm5, %v762_v21, %v446_v53  ;;  %v475_v10 = vmul.f32 %v770_v48, %v474_v1  ;;  %vm482_vm11 = vcmp.eq.f32.partialorder %v481_v59, 8.507059e+37  ;;  %v541_v21 = vmul.f32 %v533_v3, %v328_v7  ;;  %v354_v52 = vpop.f32.mrf.mxu2 }
 0x132   :  { %v455_v56 = vsel %vm1520_vm0, %v454_v42, %v450_v62  ;;  %v465_v9 = vsel %vm464_vm7, %v764_v33, %v461_v63  ;;  %v490_v16 = vmul.f32 %v772_v58, %v489_v11  ;;  %vm492_vm12 = vweird.f32 %v1491_v18 }
 0x133   :  { %v534_v8 = vmul.f32 %v455_v56, %v1390_v25  ;;  %v470_v13 = vsel %vm1525_vm3, %v469_v49, %v465_v9  ;;  %v476_v15 = vadd.f32 %v770_v48, %v475_v10  ;;  %v774_v20 = vpop.eup %773  ;;  %v484_v25 = vor.u32 1.1754944e-38, %v483_v4  ;;  %vm494_vm13 = vmor %vm492_vm12, %vm493_vm9  ;;  %651 = vmatmul.f32.vlgmr.msra.gmra.mxu1 %v541_v21  ;;  %v777_v4 = vld [vmem:[%s1581_s0] sm:$0xff] }
 0x134   :  { %v535_v60 = vmul.f32 %v470_v13, %v1392_v26  ;;  %v491_v24 = vadd.f32 %v772_v58, %v490_v16  ;;  %v503_v27 = vmul.f32 %v774_v20, %v1531_v51  ;;  %v374_v26 = vpop.f32.mrf.mxu3  ;;  %v499_v29 = vor.u32 1.1754944e-38, %v498_v14  ;;  %v778_v14 = vld [vmem:[%s1581_s0 + $0x8] sm:$0xff] }
 0x135   :  { %v542_v22 = vmul.f32 %v534_v8, %v351_v19  ;;  %v480_v23 = vsel %vm479_vm10, %v770_v48, %v476_v15  ;;  %vm497_vm14 = vcmp.eq.f32.partialorder %v496_v6, 8.507059e+37  ;;  %v511_v37 = vand.u32 2147483647, %v1531_v51 }
 0x136   :  { %v485_v28 = vsel %vm482_vm11, %v484_v25, %v480_v23  ;;  %v543_v32 = vmul.f32 %v535_v60, %v374_v26  ;;  %v495_v33 = vsel %vm494_vm13, %v772_v58, %v491_v24  ;;  %v504_v34 = vsub.f32 1.0, %v503_v27  ;;  %v776_v35 = vpop.eup %775 }
 0x137   :  { %674 = vmatmul.f32.vlgmr.msra.gmra.mxu2 %v542_v22  ;;  %v536_v17 = vmul.f32 %v485_v28, %v1399_v30  ;;  %v500_v36 = vsel %vm497_vm14, %v499_v29, %v495_v33  ;;  %v513_v18 = vand.u32 2147483648, %v1531_v51  ;;  %vm508_vm15 = vweird.f32 %v774_v20 }
 0x138   :  { %697 = vmatmul.f32.vlgmr.msra.gmra.mxu3 %v543_v32  ;;  %v537_v38 = vmul.f32 %v500_v36, %v1401_v31  ;;  %v505_v39 = vmul.f32 %v774_v20, %v504_v34  ;;  %v518_v0 = vmul.f32 %v776_v35, %v1539_v61  ;;  %vm507_vm0 = vweird.f32 %v1531_v51 }
 0x139   :  { %v544_v40 = vmul.f32 %v536_v17, %v308_v12  ;;  %vm509_vm1 = vmor %vm507_vm0, %vm508_vm15  ;;  %vm512_vm2 = vcmp.eq.f32.partialorder %v511_v37, 8.507059e+37  ;;  %v514_v44 = vor.u32 1.1754944e-38, %v513_v18  ;;  %v528_v45 = vand.u32 2147483648, %v1539_v61 }
 0x13a   :  { %v506_v30 = vadd.f32 %v774_v20, %v505_v39  ;;  %v519_v42 = vsub.f32 1.0, %v518_v0  ;;  %v545_v43 = vmul.f32 %v537_v38, %v331_v41  ;;  %vm523_vm3 = vweird.f32 %v776_v35 }
 0x13b   :  { %631 = vmatmul.f32.gmra.mxu0 %v544_v40  ;;  %v526_v47 = vand.u32 2147483647, %v1539_v61  ;;  %vm522_vm4 = vweird.f32 %v1539_v61  ;;  %v529_v51 = vor.u32 1.1754944e-38, %v528_v45 }
 0x13c   :  { %v510_v46 = vsel %vm509_vm1, %v774_v20, %v506_v30  ;;  %v520_v31 = vmul.f32 %v776_v35, %v519_v42  ;;  %654 = vmatmul.f32.gmra.mxu1 %v545_v43  ;;  %vm524_vm5 = vmor %vm522_vm4, %vm523_vm3  ;;  %v377_v59 = vpop.f32.mrf.mxu3 }
 0x13d   :  { %v515_v48 = vsel %vm512_vm2, %v514_v44, %v510_v46  ;;  %vm527_vm6 = vcmp.eq.f32.partialorder %v526_v47, 8.507059e+37 }
 0x13e   :  { %v538_v5 = vmul.f32 %v515_v48, %v1453_v50  ;;  %v521_v49 = vadd.f32 %v776_v35, %v520_v31 }
 0x140   :  { %v525_v53 = vsel %vm524_vm5, %v776_v35, %v521_v49  ;;  %v546_v54 = vmul.f32 %v538_v5, %v354_v52 }
 0x141   :  { %v530_v55 = vsel %vm527_vm6, %v529_v51, %v525_v53 }
 0x142   :  { %v539_v58 = vmul.f32 %v530_v55, %v1464_v57  ;;  %677 = vmatmul.f32.gmra.mxu2 %v546_v54 }
 0x144   :  { %v547_v62 = vmul.f32 %v539_v58, %v377_v59 }
 0x146   :  { %700 = vmatmul.f32.gmra.mxu3 %v547_v62 }
 0x1ad   :  { %v629_v63 = vpop.f32.mrf.mxu0 }
 0x1b0   :  { %v652_v1 = vpop.f32.mrf.mxu1 }
 0x1b1   :  { %v653_v2 = vadd.f32 %v652_v1, %v629_v63 }
 0x1b8   :  { %v632_v8 = vpop.f32.mrf.mxu0 }
 0x1b9   :  { %v655_v9 = vpop.f32.mrf.mxu1 }
 0x1ba   :  { %v675_v50 = vpop.f32.mrf.mxu2  ;;  %v656_v57 = vadd.f32 %v655_v9, %v632_v8 }
 0x1bb   :  { %v676_v3 = vadd.f32 %v675_v50, %v653_v2  ;;  %v698_v56 = vpop.f32.mrf.mxu3 }
 0x1bd   :  { %v699_v61 = vadd.f32 %v698_v56, %v676_v3 }
 0x1bf   :  { %v704_v7 = vadd.f32 %v777_v4, %v699_v61 }
 0x1c1   :  { %706 = vst [vmem:[#allocation2] sm:$0xff] %v704_v7 }
 0x1c5   :  { %v678_v10 = vpop.f32.mrf.mxu2 }
 0x1c6   :  { %v679_v11 = vadd.f32 %v678_v10, %v656_v57 }
 0x1c9   :  { %v701_v13 = vpop.f32.mrf.mxu3 }
 0x1ca   :  { %v702_v6 = vadd.f32 %v701_v13, %v679_v11 }
 0x1cc   :  { %v705_v60 = vadd.f32 %v778_v14, %v702_v6 }
 0x1ce   :  { %707 = vst [vmem:[#allocation2 + $0x8] sm:$0xff] %v705_v60 }
 0x1cf   :  { %720 = dma.vmem_to_hbm [thread:$0]  %s713_s15, 256, %s715_s18, [#allocation3], %s807_s21, %s807_s21, %s808_s22  }
 0x1d0   :  { %803 = dma.done.wait [#allocation3], 256  }
 0x1d1   :  { %804 = vsyncadd [#allocation3], 4294967040 }
 0x1d2   :  { %725 = vsyncpa [#allocation3], 1 }

// kernel: _lambda_.4
= control target key start
LH: loop header
LB: loop body
LE: loop exit
PB: predicated region body
PF: predicated region fallthrough
CT: control target
= control target key end

     0   :  { %s942_s27 = smov 0   ;;  %s1118_s0 = inlined_call_operand.vmem [shape: f32[2,8,128], index: 0, kind: input, shape index: {}]   ;;  %s1119_s1 = inlined_call_operand.vmem [shape: f32[2,8,128], index: 1, kind: input, shape index: {}]   ;;  %s1120_s2 = inlined_call_operand.vmem [shape: f32[2,8,128], index: 2, kind: input, shape index: {}]   ;;  %s1121_s3 = inlined_call_operand.vmem [shape: f32[2,8,128], index: 3, kind: input, shape index: {}]   ;;  %s1122_s4 = inlined_call_operand.vmem [shape: f32[8,128], index: 4, kind: input, shape index: {}]   ;;  %s1123_s5 = inlined_call_operand.vmem [shape: f32[8,128], index: 5, kind: input, shape index: {}]   ;;  %s1124_s6 = inlined_call_operand.vmem [shape: f32[128,128], index: 6, kind: input, shape index: {}]   ;;  %s1125_s7 = inlined_call_operand.vmem [shape: f32[128,128], index: 7, kind: input, shape index: {}]   ;;  %s1126_s8 = inlined_call_operand.vmem [shape: f32[2,8,128], index: 8, kind: output, shape index: {}]  }
   0x1 LB: > { %s835_s28 = sadd.s32 4294967295, %s892_s27   ;;  %p839_p0 = scmp.ge.s32.totalorder %s892_s27, 1  ;;  %s892_s27 = sphi %s942_s27, %s18_s27  }
   0x2   : > { %p288_p1 = scmp.lt.s32.totalorder %s892_s27, 3 }
   0x4   : > { %p289_p2 = pnand %p839_p0, %p288_p1 }
   0x5   : > { %p332_p3 = scmp.lt.s32.totalorder (!%p289_p2), %s835_s28, 1  ;;  %s894_s9 = smov (!%p289_p2), 64  }
   0x6   : > { %292 = sbr.rel (%p289_p2) target bundleno = 1084 (0x43c), region = 52  ;;  %s895_s10 = smov (!%p289_p2), 96  }
   0x7   : > { %s896_s11 = smov (!%p289_p2), 32  }
   0xb   : > { %v372_v0 = vld [vmem:[%s1124_s6 + $0x78] sm:$0xff]  ;;  %v371_v1 = vld [vmem:[%s1124_s6 + $0x70] sm:$0xff]  ;;  %v370_v2 = vld [vmem:[%s1124_s6 + $0x68] sm:$0xff]  ;;  %s1128_s28 = smov (!%p332_p3, %s835_s28), 1  ;;  %vm424_vm0 = vcmask 261120   ;;  %v419_v34 = vlaneseq  ;;  %vm453_vm2 = vcmask 64512  }
   0xc   : > { %374 = vmatpush.msra.mxu0 %v372_v0  ;;  %397 = vmatpush.msra.mxu1 %v372_v0  ;;  %v369_v3 = vld [vmem:[%s1124_s6 + $0x60] sm:$0xff]  ;;  %v368_v4 = vld [vmem:[%s1124_s6 + $0x58] sm:$0xff]  ;;  %v367_v5 = vld [vmem:[%s1124_s6 + $0x50] sm:$0xff]  ;;  %s993_s13 = sshll.u32 %s1128_s28, 3  ;;  %vm703_vm3 = vcmask 523264   ;;  %vm705_vm4 = vcmask 785408  }
   0xd   : > { %v366_v6 = vld [vmem:[%s1124_s6 + $0x48] sm:$0xff]  ;;  %v365_v7 = vld [vmem:[%s1124_s6 + $0x40] sm:$0xff]  ;;  %v364_v8 = vld [vmem:[%s1124_s6 + $0x38] sm:$0xff]  ;;  %s339_s20 = scalar_lea.vmem %s1119_s1, %s993_s13  ;;  %s343_s28 = scalar_lea.vmem %s1120_s2, %s993_s13  ;;  %v420_v35 = vshrl.u32 %v419_v34, 7  ;;  %v422_v36 = vand.u32 127, %v419_v34 }
   0xe   : > { %375 = vmatpush.msra.mxu0 %v371_v1  ;;  %398 = vmatpush.msra.mxu1 %v371_v1  ;;  %v363_v9 = vld [vmem:[%s1124_s6 + $0x30] sm:$0xff]  ;;  %v362_v10 = vld [vmem:[%s1124_s6 + $0x28] sm:$0xff]  ;;  %v361_v11 = vld [vmem:[%s1124_s6 + $0x20] sm:$0xff]  ;;  %s347_s15 = scalar_lea.vmem %s1121_s3, %s993_s13  ;;  %s351_s12 = scalar_lea.vmem %s1126_s8, %s993_s13 }
   0xf   : > { %v360_v12 = vld [vmem:[%s1124_s6 + $0x18] sm:$0xff]  ;;  %v359_v13 = vld [vmem:[%s1124_s6 + $0x10] sm:$0xff]  ;;  %v358_v14 = vld [vmem:[%s1124_s6 + $0x8] sm:$0xff]  ;;  %vm423_vm1 = vcmp.le.s32.totalorder %v422_v36, %v420_v35 }
  0x10   : > { %376 = vmatpush.msra.mxu0 %v370_v2  ;;  %399 = vmatpush.msra.mxu1 %v370_v2  ;;  %v357_v15 = vld [vmem:[%s1124_s6] sm:$0xff]  ;;  %v716_v34 = vld [vmem:[%s1125_s7 + $0x48] sm:$0xff]  ;;  %v714_v36 = vld [vmem:[%s1125_s7 + $0x38] sm:$0xff] }
  0x11   : > { %v352_v16 = vld [vmem:[%s339_s20] sm:$0xff] }
  0x12   : > { %377 = vmatpush.msra.mxu0 %v369_v3  ;;  %400 = vmatpush.msra.mxu1 %v369_v3  ;;  %v353_v17 = vld [vmem:[%s343_s28] sm:$0xff] }
  0x13   : > { %v355_v18 = vld [vmem:[%s1122_s4] sm:$0xff] }
  0x14   : > { %378 = vmatpush.msra.mxu0 %v368_v4  ;;  %401 = vmatpush.msra.mxu1 %v368_v4  ;;  %v356_v19 = vld [vmem:[%s1123_s5] sm:$0xff]  ;;  %v373_v20 = vmul.f32 %v355_v18, %v352_v16  ;;  %v396_v21 = vmul.f32 %v355_v18, %v353_v17 }
  0x15   : > { %v354_v53 = vld [vmem:[%s347_s15] sm:$0xff] }
  0x16   : > { %379 = vmatpush.msra.mxu0 %v367_v5  ;;  %402 = vmatpush.msra.mxu1 %v367_v5  ;;  %v715_v35 = vld [vmem:[%s1125_s7 + $0x40] sm:$0xff] }
  0x18   : > { %380 = vmatpush.msra.mxu0 %v366_v6  ;;  %403 = vmatpush.msra.mxu1 %v366_v6 }
  0x1a   : > { %381 = vmatpush.msra.mxu0 %v365_v7  ;;  %404 = vmatpush.msra.mxu1 %v365_v7 }
  0x1c   : > { %382 = vmatpush.msra.mxu0 %v364_v8  ;;  %405 = vmatpush.msra.mxu1 %v364_v8 }
  0x1e   : > { %383 = vmatpush.msra.mxu0 %v363_v9  ;;  %406 = vmatpush.msra.mxu1 %v363_v9 }
  0x20   : > { %384 = vmatpush.msra.mxu0 %v362_v10  ;;  %407 = vmatpush.msra.mxu1 %v362_v10 }
  0x22   : > { %385 = vmatpush.msra.mxu0 %v361_v11  ;;  %408 = vmatpush.msra.mxu1 %v361_v11 }
  0x24   : > { %386 = vmatpush.msra.mxu0 %v360_v12  ;;  %409 = vmatpush.msra.mxu1 %v360_v12 }
  0x26   : > { %387 = vmatpush.msra.mxu0 %v359_v13  ;;  %410 = vmatpush.msra.mxu1 %v359_v13 }
  0x28   : > { %388 = vmatpush.msra.mxu0 %v358_v14  ;;  %411 = vmatpush.msra.mxu1 %v358_v14 }
  0x2a   : > { %389 = vmatpush.msra.mxu0 %v357_v15  ;;  %412 = vmatpush.msra.mxu1 %v357_v15 }
  0x2b   : > { %390 = vmatmul.f32.vlgmr.msra.gmra.mxu0 %v352_v16  ;;  %413 = vmatmul.f32.vlgmr.msra.gmra.mxu1 %v353_v17 }
  0x2c   : > { %483 = vmatpush.msrb.mxu1 %v354_v53 }
  0xa8   : > { %v391_v22 = vpop.f32.mrf.mxu0  ;;  %v414_v23 = vpop.f32.mrf.mxu1 }
  0xa9   : > { %v394_v24 = vmul.f32 %v391_v22, %v356_v19  ;;  %v417_v25 = vmul.f32 %v414_v23, %v356_v19 }
  0xab   : > { %v395_v26 = vadd.f32 %v394_v24, %v373_v20  ;;  %v418_v27 = vadd.f32 %v417_v25, %v396_v21 }
  0xad   : > { %558 = vrot.lane.b32.xlu1 %v418_v27, %s894_s9  ;;  %490 = vrot.lane.b32.xlu0 %v418_v27, %s895_s10 }
  0xae   : > { %845 = vmatpush.xpose.msk.msra.mxu2 %vm424_vm0, %v418_v27  ;;  %556 = vrot.lane.b32.xlu2 %v395_v26, %s894_s9 }
  0xb1   : > { %846 = vmatmul.msk.f32.vlgmr.msra.gmra.mxu2 %vm424_vm0, %v395_v26 }
  0xb5   : > { %625 = vrot.lane.b32.xlu1 %v418_v27, %s896_s11  ;;  %488 = vrot.lane.b32.xlu0 %v395_v26, %s895_s10 }
  0xb6   : > { %623 = vrot.lane.b32.xlu2 %v395_v26, %s896_s11 }
 0x108   : > { %v557_v30 = vpop.permute.xlu2 %556 }
 0x110   : > { %v624_v33 = vpop.permute.xlu2 %623 }
 0x11f   : > { %v559_v28 = vpop.permute.xlu1 %558  ;;  %v491_v29 = vpop.permute.xlu0 %490 }
 0x120   : > { %848 = vmatpush.xpose.msk.msrb.mxu2 %vm424_vm0, %v491_v29  ;;  %851 = vmatpush.xpose.msk.msrb.mxu0 %vm424_vm0, %v559_v28  ;;  %v722_v28 = vld [vmem:[%s1125_s7 + $0x78] sm:$0xff]  ;;  %v721_v29 = vld [vmem:[%s1125_s7 + $0x70] sm:$0xff] }
 0x123   : > { %852 = vmatmul.msk.f32.vlgmr.msrb.gmra.mxu0 %vm424_vm0, %v557_v30  ;;  %v720_v30 = vld [vmem:[%s1125_s7 + $0x68] sm:$0xff] }
 0x127   : > { %v626_v31 = vpop.permute.xlu1 %625  ;;  %v489_v32 = vpop.permute.xlu0 %488 }
 0x128   : > { %849 = vmatmul.msk.f32.vlgmr.msrb.gmra.mxu2 %vm424_vm0, %v489_v32  ;;  %854 = vmatpush.xpose.msk.msra.mxu3 %vm424_vm0, %v626_v31  ;;  %v719_v31 = vld [vmem:[%s1125_s7 + $0x60] sm:$0xff]  ;;  %v718_v32 = vld [vmem:[%s1125_s7 + $0x58] sm:$0xff] }
 0x12b   : > { %855 = vmatmul.msk.f32.vlgmr.msra.gmra.mxu3 %vm424_vm0, %v624_v33  ;;  %v717_v33 = vld [vmem:[%s1125_s7 + $0x50] sm:$0xff] }
 0x12c   : > { %723 = vmatpush.msrb.mxu3 %v722_v28 }
 0x12e   : > { %724 = vmatpush.msrb.mxu3 %v721_v29 }
 0x130   : > { %725 = vmatpush.msrb.mxu3 %v720_v30 }
 0x132   : > { %726 = vmatpush.msrb.mxu3 %v719_v31 }
 0x134   : > { %v448_v39 = vpop.f32.mrf.mxu2  ;;  %727 = vmatpush.msrb.mxu3 %v718_v32 }
 0x135   : > { %v451_v48 = vmul.f32 0.17677669, %v448_v39  ;;  %v711_v39 = vld [vmem:[%s1125_s7 + $0x20] sm:$0xff] }
 0x136   : > { %728 = vmatpush.msrb.mxu3 %v717_v33 }
 0x137   : > { %v452_v51 = vsel %vm423_vm1, %v451_v48, -1e+30 }
 0x138   : > { %v454_v52 = vsel %vm453_vm2, %v452_v51, -inf  ;;  %729 = vmatpush.msrb.mxu3 %v716_v34 }
 0x13a   : > { %730 = vmatpush.msrb.mxu3 %v715_v35 }
 0x13c   : > { %731 = vmatpush.msrb.mxu3 %v714_v36 }
 0x1a0   : > { %v581_v37 = vpop.f32.mrf.mxu0 }
 0x1a1   : > { %v584_v38 = vmul.f32 0.17677669, %v581_v37  ;;  %v713_v37 = vld [vmem:[%s1125_s7 + $0x30] sm:$0xff] }
 0x1a2   : > { %732 = vmatpush.msrb.mxu3 %v713_v37 }
 0x1a3   : > { %v585_v40 = vsel %vm423_vm1, %v584_v38, -1e+30  ;;  %v712_v38 = vld [vmem:[%s1125_s7 + $0x28] sm:$0xff] }
 0x1a4   : > { %v586_v41 = vsel %vm453_vm2, %v585_v40, -inf  ;;  %733 = vmatpush.msrb.mxu3 %v712_v38 }
 0x1a5   : > { %587 = vmax.xlane.f32.xlu1 %v586_v41  ;;  %v709_v41 = vld [vmem:[%s1125_s7 + $0x10] sm:$0xff] }
 0x1a6   : > { %734 = vmatpush.msrb.mxu3 %v711_v39 }
 0x1ab   : > { %v513_v42 = vpop.f32.mrf.mxu2 }
 0x1ac   : > { %v516_v43 = vmul.f32 0.17677669, %v513_v42  ;;  %v708_v42 = vld [vmem:[%s1125_s7 + $0x8] sm:$0xff] }
 0x1ae   : > { %v648_v44 = vpop.f32.mrf.mxu3  ;;  %v517_v45 = vsel %vm423_vm1, %v516_v43, -1e+30  ;;  %v707_v43 = vld [vmem:[%s1125_s7] sm:$0xff] }
 0x1af   : > { %v651_v46 = vmul.f32 0.17677669, %v648_v44  ;;  %v518_v47 = vsel %vm453_vm2, %v517_v45, -inf }
 0x1b0   : > { %519 = vmax.xlane.f32.xlu0 %v518_v47 }
 0x1b1   : > { %v652_v49 = vsel %vm423_vm1, %v651_v46, -1e+30 }
 0x1b2   : > { %v653_v50 = vsel %vm453_vm2, %v652_v49, -inf }
 0x1b3   : > { %654 = vmax.xlane.f32.xlu2 %v653_v50 }
 0x1b8   : > { %455 = vmax.xlane.f32.xlu0 %v454_v52 }
 0x218   : > { %v588_v54 = vpop.xlane.xlu1 %587 }
 0x219   : > { %v589_v55 = vsub.f32 %v585_v40, %v588_v54  ;;  %v710_v40 = vld [vmem:[%s1125_s7 + $0x18] sm:$0xff] }
 0x21a   : > { %735 = vmatpush.msrb.mxu3 %v710_v40 }
 0x21b   : > { %v590_v56 = vmul.f32 1.442695, %v589_v55 }
 0x21c   : > { %736 = vmatpush.msrb.mxu3 %v709_v41 }
 0x21d   : > { %870 = vpow2.f32 %v590_v56 }
 0x21e   : > { %737 = vmatpush.msrb.mxu3 %v708_v42 }
 0x220   : > { %738 = vmatpush.msrb.mxu3 %v707_v43 }
 0x223   : > { %v871_v57 = vpop.eup %870  ;;  %v520_v58 = vpop.xlane.xlu0 %519 }
 0x224   : > { %v521_v59 = vsub.f32 %v517_v45, %v520_v58  ;;  %v592_v60 = vsel %vm453_vm2, %v871_v57, 0.0 }
 0x225   : > { %593 = vadd.xlane.f32.xlu1 %v592_v60 }
 0x226   : > { %v522_v61 = vmul.f32 1.442695, %v521_v59  ;;  %v655_v62 = vpop.xlane.xlu2 %654 }
 0x227   : > { %v656_v63 = vsub.f32 %v652_v49, %v655_v62 }
 0x228   : > { %872 = vpow2.f32 %v522_v61 }
 0x229   : > { %v657_v0 = vmul.f32 1.442695, %v656_v63 }
 0x22b   : > { %874 = vpow2.f32 %v657_v0  ;;  %v456_v5 = vpop.xlane.xlu0 %455 }
 0x22c   : > { %v457_v6 = vsub.f32 %v452_v51, %v456_v5 }
 0x22e   : > { %v873_v1 = vpop.eup %872  ;;  %v458_v7 = vmul.f32 1.442695, %v457_v6 }
 0x22f   : > { %v524_v2 = vsel %vm453_vm2, %v873_v1, 0.0 }
 0x230   : > { %525 = vadd.xlane.f32.xlu2 %v524_v2  ;;  %876 = vpow2.f32 %v458_v7 }
 0x231   : > { %v875_v3 = vpop.eup %874 }
 0x232   : > { %v659_v4 = vsel %vm453_vm2, %v875_v3, 0.0 }
 0x233   : > { %660 = vadd.xlane.f32.xlu0 %v659_v4 }
 0x236   : > { %v877_v8 = vpop.eup %876 }
 0x237   : > { %v460_v9 = vsel %vm453_vm2, %v877_v8, 0.0 }
 0x23e   : > { %597 = vrot.lane.b32.xlu1 %v354_v53, %s894_s9 }
 0x247   : > { %664 = vrot.lane.b32.xlu0 %v354_v53, %s896_s11 }
 0x248   : > { %530 = vrot.lane.b32.xlu2 %v354_v53, %s895_s10 }
 0x271   : > { %461 = vadd.xlane.f32.xlu2 %v460_v9 }
 0x298   : > { %v594_v11 = vpop.xlane.xlu1 %593 }
 0x2a3   : > { %v526_v10 = vpop.xlane.xlu2 %525 }
 0x2a4   : > { %878 = vrcp.f32 %v526_v10 }
 0x2a5   : > { %880 = vrcp.f32 %v594_v11 }
 0x2a6   : > { %v661_v15 = vpop.xlane.xlu0 %660 }
 0x2a7   : > { %882 = vrcp.f32 %v661_v15 }
 0x2aa   : > { %v879_v12 = vpop.eup %878 }
 0x2ab   : > { %v528_v13 = vmul.f32 %v879_v12, %v873_v1  ;;  %v531_v14 = vpop.permute.xlu2 %530  ;;  %v881_v16 = vpop.eup %880 }
 0x2ac   : > { %551 = vmatpush.msra.mxu2 %v531_v14  ;;  %v596_v18 = vmul.f32 %v881_v16, %v871_v57 }
 0x2ad   : > { %850 = vmatmul.msk.f32.vlgmr.msra.gmra.mxu2 %vm453_vm2, %v528_v13  ;;  %v883_v19 = vpop.eup %882 }
 0x2ae   : > { %v663_v21 = vmul.f32 %v883_v19, %v875_v3 }
 0x2b0   : > { %v598_v17 = vpop.permute.xlu1 %597 }
 0x2b1   : > { %618 = vmatpush.msrb.mxu2 %v598_v17 }
 0x2b5   : > { %853 = vmatmul.msk.f32.vlgmr.msrb.gmra.mxu2 %vm453_vm2, %v596_v18 }
 0x2b9   : > { %v665_v20 = vpop.permute.xlu0 %664 }
 0x2ba   : > { %685 = vmatpush.msra.mxu2 %v665_v20 }
 0x2bd   : > { %856 = vmatmul.msk.f32.vlgmr.msra.gmra.mxu2 %vm453_vm2, %v663_v21 }
 0x2e4   : > { %v462_v22 = vpop.xlane.xlu2 %461 }
 0x2e5   : > { %884 = vrcp.f32 %v462_v22 }
 0x2eb   : > { %v885_v23 = vpop.eup %884 }
 0x2ec   : > { %v464_v24 = vmul.f32 %v885_v23, %v877_v8 }
 0x2ee   : > { %847 = vmatmul.msk.f32.vlgmr.msrb.gmra.mxu1 %vm453_vm2, %v464_v24 }
 0x330   : > { %v553_v25 = vpop.f32.mrf.mxu2 }
 0x331   : > { %691 = vrot.lane.b32.xlu1 %v553_v25, %s896_s11 }
 0x338   : > { %v620_v26 = vpop.f32.mrf.mxu2 }
 0x339   : > { %695 = vrot.lane.b32.xlu0 %v620_v26, %s894_s9  ;;  %s335_s9 = scalar_lea.vmem %s1118_s0, %s993_s13 }
 0x33a   : > { %v743_v51 = vld [vmem:[%s335_s9] sm:$0xff] }
 0x340   : > { %v687_v27 = vpop.f32.mrf.mxu2 }
 0x341   : > { %699 = vrot.lane.b32.xlu1 %v687_v27, %s895_s10 }
 0x36b   : > { %v485_v46 = vpop.f32.mrf.mxu1 }
 0x3a3   : > { %v692_v44 = vpop.permute.xlu1 %691 }
 0x3a4   : > { %v702_v47 = vsel %vm424_vm0, %v485_v46, %v692_v44 }
 0x3ab   : > { %v696_v45 = vpop.permute.xlu0 %695 }
 0x3ac   : > { %v704_v48 = vsel %vm703_vm3, %v702_v47, %v696_v45 }
 0x3b3   : > { %v700_v49 = vpop.permute.xlu1 %699 }
 0x3b4   : > { %v706_v50 = vsel %vm705_vm4, %v704_v48, %v700_v49 }
 0x3b5   : > { %739 = vmatmul.f32.vlgmr.msrb.gmra.mxu3 %v706_v50 }
 0x438   : > { %v740_v52 = vpop.f32.mrf.mxu3 }
 0x439   : > { %v744_v53 = vadd.f32 %v743_v51, %v740_v52 }
 0x43b   : > { %745 = vst [vmem:[%s351_s12] sm:$0xff] %v744_v53 }
 0x43c PF: > { %s18_s27 = sadd.s32 1, %s892_s27  }
 0x43d   : > { %p15_p4 = scmp.ge.s32.totalorder %s18_s27, 4  }
 0x43f   :  { %17 = sbr.rel (!%p15_p4) target bundleno = 1 (0x1), region = 91 }

</bundles_post_ra>
